<compile_context>
chip_gen: v6e
topology: v6e:2x2x1
jax: 0.10.0
libtpu: 0.0.40
codegen_flags: <defaults>
</compile_context>

<pallas_src>
import math
import functools

import jax
import jax.numpy as jnp
from jax.experimental import pallas as pl
from jax.experimental.pallas import tpu as pltpu

LANE = 128
NEG_INF = -1e30            # additive mask bias; must dominate any real score
LEAKY_SLOPE = 0.01         # F.leaky_relu default negative_slope
ROW_TILE_TARGET = 512
COL_TILE_TARGET = 1024


def _round_up(x, m):
    return ((x + m - 1) // m) * m


def _pad2d(x, rows, cols, dtype=None):
    out = jnp.zeros((rows, cols), x.dtype if dtype is None else dtype)
    return out.at[:x.shape[0], :x.shape[1]].set(x.astype(out.dtype))


def _vmem_limit_bytes():
    """Generation-aware VMEM budget (~85% of per-core capacity)."""
    cap = 64 * 1024 * 1024                       # conservative fallback (v7x per-TC)
    try:
        info = pltpu.get_tpu_info()
        c = getattr(info, "vmem_capacity_bytes", None)
        if c:
            cap = int(c)
    except Exception:
        pass
    cap = max(32 * 1024 * 1024, min(cap, 128 * 1024 * 1024))
    return int(cap * 0.85)


def _row_tiling(n, target=ROW_TILE_TARGET):
    """Destination-row tile and padded extent.  Produces >=2 row tiles when
    possible (so the 'parallel' axis shards across v7x's 2 TensorCores) and
    keeps tiles 16-sublane aligned for bf16 blocks."""
    n8 = _round_up(max(n, 1), 8)
    if n8 > 2 * target:
        t = target
    elif n8 >= 32:
        t = _round_up((n8 + 1) // 2, 16)
    else:
        t = n8
    return t, _round_up(max(n, 1), t)


def _col_tiling(padded, row_tile, target=COL_TILE_TARGET):
    """Source (reduction) tile: the whole axis if it fits, else the largest
    multiple of row_tile dividing `padded` that is <= target."""
    if padded <= target:
        return padded
    best = row_tile
    k = 2
    while row_tile * k <= target:
        if padded % (row_tile * k) == 0:
            best = row_tile * k
        k += 1
    return best


def _fused_layout(widths):
    """Column offsets for fused projection slabs; each slab starts at a
    multiple of its own (lane-padded) width so a BlockSpec index_map can pick
    it with an exact block index (no XLA strided-slice copies)."""
    offs, cur = [], 0
    for w in widths:
        cur = _round_up(cur, w)
        offs.append(cur)
        cur += w
    return offs, cur


# ---------------------------------------------------------------------------
# Projection kernels (bf16 MXU operands, f32 accumulate, weights VMEM-resident)
# ---------------------------------------------------------------------------
def _linear_kernel(x_ref, w_ref, b_ref, o_ref):
    x = x_ref[...].astype(jnp.bfloat16)
    acc = jnp.dot(x, w_ref[...], preferred_element_type=jnp.float32) + b_ref[...]
    o_ref[...] = acc.astype(o_ref.dtype)


def _chained_linear_kernel(x_ref, w1_ref, b1_ref, w2_ref, b2_ref, o_ref):
    # o = (x @ w1 + b1) @ w2 + b2 ; the intermediate never round-trips HBM.
    x = x_ref[...].astype(jnp.bfloat16)
    h = jnp.dot(x, w1_ref[...], preferred_element_type=jnp.float32) + b1_ref[...]
    h = h.astype(jnp.bfloat16)
    o = jnp.dot(h, w2_ref[...], preferred_element_type=jnp.float32) + b2_ref[...]
    o_ref[...] = o.astype(o_ref.dtype)


def _linear(x, w, b, out_dtype, row_tile, vmem_limit):
    rows, fin = x.shape
    fout = w.shape[1]
    return pl.pallas_call(
        _linear_kernel,
        out_shape=jax.ShapeDtypeStruct((rows, fout), out_dtype),
        grid=(rows // row_tile,),
        in_specs=[pl.BlockSpec((row_tile, fin), lambda i: (i, 0)),
                  pl.BlockSpec((fin, fout), lambda i: (0, 0)),
                  pl.BlockSpec((1, fout), lambda i: (0, 0))],
        out_specs=pl.BlockSpec((row_tile, fout), lambda i: (i, 0)),
        compiler_params=pltpu.CompilerParams(
            dimension_semantics=("parallel",), vmem_limit_bytes=vmem_limit),
    )(x, w, b)


def _chained_linear(x, w1, b1, w2, b2, out_dtype, row_tile, vmem_limit):
    rows, fin = x.shape
    mid = w1.shape[1]
    fout = w2.shape[1]
    return pl.pallas_call(
        _chained_linear_kernel,
        out_shape=jax.ShapeDtypeStruct((rows, fout), out_dtype),
        grid=(rows // row_tile,),
        in_specs=[pl.BlockSpec((row_tile, fin), lambda i: (i, 0)),
                  pl.BlockSpec((fin, mid), lambda i: (0, 0)),
                  pl.BlockSpec((1, mid), lambda i: (0, 0)),
                  pl.BlockSpec((mid, fout), lambda i: (0, 0)),
                  pl.BlockSpec((1, fout), lambda i: (0, 0))],
        out_specs=pl.BlockSpec((row_tile, fout), lambda i: (i, 0)),
        compiler_params=pltpu.CompilerParams(
            dimension_semantics=("parallel",), vmem_limit_bytes=vmem_limit),
    )(x, w1, b1, w2, b2)


# ---------------------------------------------------------------------------
# Masked flash-attention kernel (dst-row tiles x src-col tiles)
#   out = relu( softmax_incident( leaky_relu(q . k) ) @ v ) [* drop]
#   optional fused epilogue projection: p2 = out @ w2 + b2
# q is pre-scaled by 1/sqrt(query_dim) (folded into the projection weights).
# ---------------------------------------------------------------------------
def _attn_kernel(fuse_proj, has_dropout, *refs):
    q_ref, k_ref, v_ref, bias_ref = refs[:4]
    idx = 4
    w2_ref = b2_ref = drop_ref = p2_ref = None
    if fuse_proj:
        w2_ref, b2_ref = refs[idx], refs[idx + 1]
        idx += 2
    if has_dropout:
        drop_ref = refs[idx]
        idx += 1
    o_ref = refs[idx]
    idx += 1
    if fuse_proj:
        p2_ref = refs[idx]
        idx += 1
    m_sc, l_sc = refs[idx], refs[idx + 1]

    j = pl.program_id(1)

    @pl.when(j == 0)
    def _init():
        m_sc[...] = jnp.full(m_sc.shape, NEG_INF, m_sc.dtype)
        l_sc[...] = jnp.zeros(l_sc.shape, l_sc.dtype)
        o_ref[...] = jnp.zeros(o_ref.shape, o_ref.dtype)

    # scores: contract last dims directly (no transpose), f32 accumulation.
    s = jax.lax.dot_general(
        q_ref[...], k_ref[...],
        dimension_numbers=(((1,), (1,)), ((), ())),
        preferred_element_type=jnp.float32)
    s = jnp.maximum(s, LEAKY_SLOPE * s)            # leaky_relu, single VPU max
    s = s + bias_ref[...].astype(jnp.float32)      # additive mask (0 / -1e30)

    # online softmax; output block is VMEM-resident across j -> accumulate there.
    m_prev = m_sc[...]
    m_new = jnp.maximum(m_prev, jnp.max(s, axis=-1, keepdims=True))
    alpha = jnp.exp(m_prev - m_new)
    p = jnp.exp(s - m_new)
    l_sc[...] = alpha * l_sc[...] + jnp.sum(p, axis=-1, keepdims=True)
    o_ref[...] = alpha * o_ref[...] + jnp.dot(
        p.astype(jnp.bfloat16), v_ref[...], preferred_element_type=jnp.float32)
    m_sc[...] = m_new

    @pl.when(j == pl.num_programs(1) - 1)
    def _finalize():
        # Rows with no incident source never see a real score: m stays at the
        # NEG_INF sentinel (real scores are O(1), far above 0.5*NEG_INF).
        # Zero them, matching DGL's zero-fill of 0-in-degree destinations.
        has_msg = m_sc[...] > 0.5 * NEG_INF
        out = o_ref[...] * pl.reciprocal(l_sc[...], approx=True)
        out = jnp.where(has_msg, jnp.maximum(out, 0.0), 0.0)     # relu + guard
        if drop_ref is not None:
            out = out * drop_ref[...].astype(jnp.float32)        # inverted dropout
        o_ref[...] = out
        if fuse_proj:
            # fold the next linear projection into the epilogue (kve = out@W+b)
            p2_ref[...] = (jnp.dot(out.astype(jnp.bfloat16), w2_ref[...],
                                   preferred_element_type=jnp.float32)
                           + b2_ref[...]).astype(p2_ref.dtype)


def _masked_attention(q_src, k_src, v_src, bias, *, row_tile, col_tile,
                      drop=None, proj=None, vmem_limit):
    """q_src/k_src/v_src are (array, slab_width, slab_col_offset): each slab is
    selected in-place via the BlockSpec index_map (no XLA slice copies)."""
    q_arr, qw, qo = q_src
    k_arr, kw, ko = k_src
    v_arr, vw, vo = v_src
    rows = q_arr.shape[0]
    cols = k_arr.shape[0]
    fuse = proj is not None
    has_drop = drop is not None

    in_specs = [
        pl.BlockSpec((row_tile, qw), lambda i, j, c=qo // qw: (i, c)),
        pl.BlockSpec((col_tile, kw), lambda i, j, c=ko // kw: (j, c)),
        pl.BlockSpec((col_tile, vw), lambda i, j, c=vo // vw: (j, c)),
        pl.BlockSpec((row_tile, col_tile), lambda i, j: (i, j)),
    ]
    args = [q_arr, k_arr, v_arr, bias]

    out_shape = jax.ShapeDtypeStruct((rows, vw), jnp.float32)
    out_specs = pl.BlockSpec((row_tile, vw), lambda i, j: (i, 0))
    if fuse:
        w2, b2 = proj
        in_specs += [pl.BlockSpec(w2.shape, lambda i, j: (0, 0)),
                     pl.BlockSpec(b2.shape, lambda i, j: (0, 0))]
        args += [w2, b2]
        out_shape = (out_shape,
                     jax.ShapeDtypeStruct((rows, w2.shape[1]), jnp.bfloat16))
        out_specs = (out_specs,
                     pl.BlockSpec((row_tile, w2.shape[1]), lambda i, j: (i, 0)))
    if has_drop:
        in_specs.append(pl.BlockSpec((row_tile, vw), lambda i, j: (i, 0)))
        args.append(drop)

    return pl.pallas_call(
        functools.partial(_attn_kernel, fuse, has_drop),
        out_shape=out_shape,
        grid=(rows // row_tile, cols // col_tile),
        in_specs=in_specs,
        out_specs=out_specs,
        scratch_shapes=[pltpu.VMEM((row_tile, 1), jnp.float32),   # running max
                        pltpu.VMEM((row_tile, 1), jnp.float32)],  # running sum
        compiler_params=pltpu.CompilerParams(
            dimension_semantics=("parallel", "arbitrary"),
            vmem_limit_bytes=vmem_limit),
    )(*args)


# ---------------------------------------------------------------------------
# Forward pass (host-side glue: padding, weight fusion, pallas_call sequence)
# ---------------------------------------------------------------------------
def hyper_attn_forward(vfeat, efeat, incidence, params, *, dropout_p,
                       dropout_key):
    Nv, input_vdim = vfeat.shape
    Ne, input_edim = efeat.shape
    Qd = params["w_kv"].shape[1]
    Vd = params["w_vtx"].shape[1]
    Ed = params["w_vv"].shape[1]

    Qp, Vp, Ep = (_round_up(d, LANE) for d in (Qd, Vd, Ed))
    vmem_limit = _vmem_limit_bytes()

    tile_v, Nvp = _row_tiling(Nv)
    tile_e, Nep = _row_tiling(Ne)
    col_v = _col_tiling(Nvp, tile_v)      # node axis as attention source
    col_e = _col_tiling(Nep, tile_e)      # edge axis as attention source

    inv_sqrt_q = 1.0 / math.sqrt(Qd)

    # fused projection layouts: kvq = [k1 | v1 | q2], kve = [k2 | v2]
    (off_k1, off_v1, off_q2), W1 = _fused_layout([Qp, Ep, Qp])
    (off_k2, off_v2), W2 = _fused_layout([Qp, Vp])

    # ---- padded / fused weights (host-side, tiny) --------------------------
    w_vtx = _pad2d(params["w_vtx"], input_vdim, Vp).astype(jnp.bfloat16)
    b_vtx = _pad2d(params["b_vtx"], 1, Vp)

    # 1/sqrt(query_dim) folded into the q projections (leaky_relu is
    # positively homogeneous, so the ordering matches the reference).
    w_qe = _pad2d(params["w_qe"] * inv_sqrt_q, input_edim, Qp).astype(jnp.bfloat16)
    b_qe = _pad2d(params["b_qe"] * inv_sqrt_q, 1, Qp)

    w_kvq = jnp.zeros((Vp, W1), jnp.float32)
    w_kvq = w_kvq.at[:Vd, off_k1:off_k1 + Qd].set(params["w_kv"])
    w_kvq = w_kvq.at[:Vd, off_v1:off_v1 + Ed].set(params["w_vv"])
    w_kvq = w_kvq.at[:Vd, off_q2:off_q2 + Qd].set(params["w_qv"] * inv_sqrt_q)
    w_kvq = w_kvq.astype(jnp.bfloat16)
    b_kvq = jnp.zeros((1, W1), jnp.float32)
    b_kvq = b_kvq.at[:, off_k1:off_k1 + Qd].set(params["b_kv"])
    b_kvq = b_kvq.at[:, off_v1:off_v1 + Ed].set(params["b_vv"])
    b_kvq = b_kvq.at[:, off_q2:off_q2 + Qd].set(params["b_qv"] * inv_sqrt_q)

    w_kve = jnp.zeros((Ep, W2), jnp.float32)
    w_kve = w_kve.at[:Ed, off_k2:off_k2 + Qd].set(params["w_ke"])
    w_kve = w_kve.at[:Ed, off_v2:off_v2 + Vd].set(params["w_ve"])
    w_kve = w_kve.astype(jnp.bfloat16)
    b_kve = jnp.zeros((1, W2), jnp.float32)
    b_kve = b_kve.at[:, off_k2:off_k2 + Qd].set(params["b_ke"])
    b_kve = b_kve.at[:, off_v2:off_v2 + Vd].set(params["b_ve"])

    # ---- padded activations and additive incidence bias (bf16: 0 / -1e30) --
    vfeat_p = _pad2d(vfeat, Nvp, input_vdim)
    efeat_p = _pad2d(efeat, Nep, input_edim)
    inc = (incidence > 0).astype(jnp.float32)                    # [Ne, Nv]
    inc_ev = _pad2d(inc, Nep, Nvp)
    inc_ve = _pad2d(inc.T, Nvp, Nep)
    bias_ev = ((inc_ev - 1.0) * (-NEG_INF)).astype(jnp.bfloat16)  # 0 or -1e30
    bias_ve = ((inc_ve - 1.0) * (-NEG_INF)).astype(jnp.bfloat16)

    # ---- dropout keep-mask (train-mode F.dropout, inverted), bf16 ----------
    # TODO(synk): could be generated in-kernel with pltpu.prng_* on hardware;
    # kept host-side (bf16) to stay interpret-mode friendly.
    if dropout_p > 0.0:
        keep = jax.random.bernoulli(dropout_key, 1.0 - dropout_p, (Nvp, Vp))
        drop_scale = (keep.astype(jnp.float32) /
                      (1.0 - dropout_p)).astype(jnp.bfloat16)
    else:
        drop_scale = None

    # ---- projections --------------------------------------------------------
    # q1 = qe_lin(efeat) (pre-scaled);  kvq = [kv|vv|qv](vtx_lin(vfeat)) with
    # vtx_lin chained in-kernel so feat_v never hits HBM.
    q1 = _linear(efeat_p, w_qe, b_qe, jnp.bfloat16, tile_e, vmem_limit)        # [Nep, Qp]
    kvq = _chained_linear(vfeat_p, w_vtx, b_vtx, w_kvq, b_kvq,
                          jnp.bfloat16, tile_v, vmem_limit)                    # [Nvp, W1]

    # ---- phase 1: nodes -> hyperedges (g1, etype='in'); ke/ve fused epilogue
    feat_e_p, kve = _masked_attention(
        (q1, Qp, 0), (kvq, Qp, off_k1), (kvq, Ep, off_v1), bias_ev,
        row_tile=tile_e, col_tile=col_v, proj=(w_kve, b_kve),
        vmem_limit=vmem_limit)                       # [Nep, Ep] f32, [Nep, W2] bf16

    # ---- phase 2: hyperedges -> nodes (g2, etype='con') + relu + dropout ----
    feat_v_p = _masked_attention(
        (kvq, Qp, off_q2), (kve, Qp, off_k2), (kve, Vp, off_v2), bias_ve,
        row_tile=tile_v, col_tile=col_e, drop=drop_scale,
        vmem_limit=vmem_limit)                       # [Nvp, Vp] f32

    # TODO(synk): weight_dim > 0 (wt_lin on per-edge weights) path not implemented.
    return feat_v_p[:Nv, :Vd], feat_e_p[:Ne, :Ed]


# ---------------------------------------------------------------------------
# Dense pure-JAX reference (dropout disabled) for correctness checking
# ---------------------------------------------------------------------------
def _dense_reference(vfeat, efeat, H, params, Qd):
    inv = 1.0 / math.sqrt(Qd)
    leaky = lambda x: jnp.where(x >= 0, x, LEAKY_SLOPE * x)

    def masked_softmax_aggr(q, k, v, mask):
        s = leaky(q @ k.T) * inv
        s = jnp.where(mask > 0, s, -jnp.inf)
        a = jax.nn.softmax(s, axis=-1)
        a = jnp.where(mask > 0, a, 0.0)
        return a @ v

    feat_v = vfeat @ params["w_vtx"] + params["b_vtx"]
    q1 = efeat @ params["w_qe"] + params["b_qe"]
    k1 = feat_v @ params["w_kv"] + params["b_kv"]
    v1 = feat_v @ params["w_vv"] + params["b_vv"]
    q2 = feat_v @ params["w_qv"] + params["b_qv"]

    feat_e = jax.nn.relu(masked_softmax_aggr(q1, k1, v1, H))
    k2 = feat_e @ params["w_ke"] + params["b_ke"]
    v2 = feat_e @ params["w_ve"] + params["b_ve"]
    feat_v_out = jax.nn.relu(masked_softmax_aggr(q2, k2, v2, H.T))
    return feat_v_out, feat_e


if __name__ == "__main__":
    # Small, self-consistent sizes (weight_dim = 0 path).
    Nv, Ne = 16, 8
    input_vdim, input_edim = 32, 24
    query_dim, vertex_dim, edge_dim = 16, 32, 32
    dropout_p = 0.5

    key = jax.random.PRNGKey(0)
    keys = jax.random.split(key, 20)

    def make_linear(kw, kb, fin, fout):
        # PyTorch nn.Linear-style init: U(-1/sqrt(fan_in), 1/sqrt(fan_in)).
        bound = 1.0 / math.sqrt(fin)
        w = jax.random.uniform(kw, (fin, fout), jnp.float32, -bound, bound)
        b = jax.random.uniform(kb, (1, fout), jnp.float32, -bound, bound)
        return w, b

    params = {}
    params["w_vtx"], params["b_vtx"] = make_linear(keys[0], keys[1], input_vdim, vertex_dim)
    params["w_qe"], params["b_qe"] = make_linear(keys[2], keys[3], input_edim, query_dim)
    params["w_kv"], params["b_kv"] = make_linear(keys[4], keys[5], vertex_dim, query_dim)
    params["w_vv"], params["b_vv"] = make_linear(keys[6], keys[7], vertex_dim, edge_dim)
    params["w_qv"], params["b_qv"] = make_linear(keys[8], keys[9], vertex_dim, query_dim)
    params["w_ke"], params["b_ke"] = make_linear(keys[10], keys[11], edge_dim, query_dim)
    params["w_ve"], params["b_ve"] = make_linear(keys[12], keys[13], edge_dim, vertex_dim)

    vfeat = jax.random.normal(keys[14], (Nv, input_vdim), jnp.float32)
    efeat = jax.random.normal(keys[15], (Ne, input_edim), jnp.float32)

    # Deterministic incidence H[e, v]; every hyperedge has >=1 node and every
    # node belongs to >=1 hyperedge (no empty softmax rows in the demo).
    H = (jax.random.uniform(keys[16], (Ne, Nv)) < 0.4).astype(jnp.float32)
    H = H.at[jnp.arange(Ne), jnp.arange(Ne) % Nv].set(1.0)
    H = H.at[jnp.arange(Nv) % Ne, jnp.arange(Nv)].set(1.0)

    fwd_eval = jax.jit(lambda v, e, h, p, k: hyper_attn_forward(
        v, e, h, p, dropout_p=0.0, dropout_key=k))
    fwd_train = jax.jit(lambda v, e, h, p, k: hyper_attn_forward(
        v, e, h, p, dropout_p=dropout_p, dropout_key=k))

    # correctness check (dropout disabled) against a dense f32 reference
    fv_k, fe_k = fwd_eval(vfeat, efeat, H, params, keys[17])
    jax.block_until_ready((fv_k, fe_k))
    fv_r, fe_r = _dense_reference(vfeat, efeat, H, params, query_dim)
    assert bool(jnp.allclose(fv_k, fv_r, atol=0.1, rtol=0.1)), "feat_v mismatch"
    assert bool(jnp.allclose(fe_k, fe_r, atol=0.1, rtol=0.1)), "feat_e mismatch"

    # training-mode run with dropout fused into the phase-2 epilogue
    feat_v_out, feat_e_out = fwd_train(vfeat, efeat, H, params, keys[17])
    jax.block_until_ready((feat_v_out, feat_e_out))

    assert feat_v_out.shape == (Nv, vertex_dim)
    assert feat_e_out.shape == (Ne, edge_dim)
    assert bool(jnp.all(jnp.isfinite(feat_v_out)))
    assert bool(jnp.all(jnp.isfinite(feat_e_out)))
    print("KERNEL_OK")
</pallas_src>

<mosaic_0001>
module attributes {stable_mosaic.version = 11 : i64} {
  func.func @_linear_kernel(%arg0: i32, %arg1: memref<8x24xf32, #tpu.memory_space<vmem>>, %arg2: memref<24x128xbf16, #tpu.memory_space<vmem>>, %arg3: memref<1x128xf32, #tpu.memory_space<vmem>>, %arg4: memref<8x128xbf16, #tpu.memory_space<vmem>>) attributes {dimension_semantics = [#tpu.dimension_semantics<parallel>], iteration_bounds = array<i64: 1>, scalar_prefetch = 0 : i64, scratch_operands = 0 : i64, tpu.core_type = #tpu.core_type<tc>, window_params = [{transform_indices = @transform_0, window_bounds = array<i64: 8, 24>}, {pipeline_mode = #tpu.pipeline_mode<synchronous>, transform_indices = @transform_1, window_bounds = array<i64: 24, 128>}, {pipeline_mode = #tpu.pipeline_mode<synchronous>, transform_indices = @transform_2, window_bounds = array<i64: 1, 128>}, {transform_indices = @transform_3, window_bounds = array<i64: 8, 128>}]} {
    %c0 = arith.constant 0 : index
    %c0_0 = arith.constant 0 : index
    %0 = vector.load %arg1[%c0, %c0_0] : memref<8x24xf32, #tpu.memory_space<vmem>>, vector<8x24xf32>
    %1 = arith.truncf %0 : vector<8x24xf32> to vector<8x24xbf16>
    %c0_1 = arith.constant 0 : index
    %c0_2 = arith.constant 0 : index
    %2 = vector.load %arg2[%c0_1, %c0_2] : memref<24x128xbf16, #tpu.memory_space<vmem>>, vector<24x128xbf16>
    %cst = arith.constant dense<0.000000e+00> : vector<8x128xf32>
    %3 = tpu.matmul %1, %2, %cst {dimension_numbers = #tpu.dot_dimension_numbers<[1], [0], [0], [1], [0, 0, 1, 1], [], []>} : vector<8x24xbf16>, vector<24x128xbf16>, vector<8x128xf32> -> vector<8x128xf32>
    %c0_3 = arith.constant 0 : index
    %c0_4 = arith.constant 0 : index
    %4 = vector.load %arg3[%c0_3, %c0_4] : memref<1x128xf32, #tpu.memory_space<vmem>>, vector<1x128xf32>
    %5 = vector.broadcast %4 : vector<1x128xf32> to vector<8x128xf32>
    %6 = arith.addf %3, %5 : vector<8x128xf32>
    %7 = arith.truncf %6 : vector<8x128xf32> to vector<8x128xbf16>
    %c0_5 = arith.constant 0 : index
    %c0_6 = arith.constant 0 : index
    %8 = vector.load %arg4[%c0_5, %c0_6] : memref<8x128xbf16, #tpu.memory_space<vmem>>, vector<8x128xbf16>
    tpu.vector_store %arg4[%c0_5, %c0_6], %7 {strides = array<i32>} : memref<8x128xbf16, #tpu.memory_space<vmem>>, vector<8x128xbf16>,
    return
  }
  func.func @transform_0(%arg0: i32) -> (i32, i32) {
    %c0_i32 = arith.constant 0 : i32
    %c0_i32_0 = arith.constant 0 : i32
    return %arg0, %c0_i32 : i32, i32
  }
  func.func @transform_1(%arg0: i32) -> (i32, i32) {
    %c0_i32 = arith.constant 0 : i32
    %c0_i32_0 = arith.constant 0 : i32
    %c0_i32_1 = arith.constant 0 : i32
    return %c0_i32, %c0_i32_0 : i32, i32
  }
  func.func @transform_2(%arg0: i32) -> (i32, i32) {
    %c0_i32 = arith.constant 0 : i32
    %c0_i32_0 = arith.constant 0 : i32
    %c0_i32_1 = arith.constant 0 : i32
    return %c0_i32, %c0_i32_0 : i32, i32
  }
  func.func @transform_3(%arg0: i32) -> (i32, i32) {
    %c0_i32 = arith.constant 0 : i32
    %c0_i32_0 = arith.constant 0 : i32
    return %arg0, %c0_i32 : i32, i32
  }
}

module attributes {stable_mosaic.version = 11 : i64} {
  func.func @_chained_linear_kernel(%arg0: i32, %arg1: memref<16x32xf32, #tpu.memory_space<vmem>>, %arg2: memref<32x128xbf16, #tpu.memory_space<vmem>>, %arg3: memref<1x128xf32, #tpu.memory_space<vmem>>, %arg4: memref<128x384xbf16, #tpu.memory_space<vmem>>, %arg5: memref<1x384xf32, #tpu.memory_space<vmem>>, %arg6: memref<16x384xbf16, #tpu.memory_space<vmem>>) attributes {dimension_semantics = [#tpu.dimension_semantics<parallel>], iteration_bounds = array<i64: 1>, scalar_prefetch = 0 : i64, scratch_operands = 0 : i64, tpu.core_type = #tpu.core_type<tc>, window_params = [{transform_indices = @transform_0, window_bounds = array<i64: 16, 32>}, {pipeline_mode = #tpu.pipeline_mode<synchronous>, transform_indices = @transform_1, window_bounds = array<i64: 32, 128>}, {pipeline_mode = #tpu.pipeline_mode<synchronous>, transform_indices = @transform_2, window_bounds = array<i64: 1, 128>}, {pipeline_mode = #tpu.pipeline_mode<synchronous>, transform_indices = @transform_3, window_bounds = array<i64: 128, 384>}, {pipeline_mode = #tpu.pipeline_mode<synchronous>, transform_indices = @transform_4, window_bounds = array<i64: 1, 384>}, {transform_indices = @transform_5, window_bounds = array<i64: 16, 384>}]} {
    %c0 = arith.constant 0 : index
    %c0_0 = arith.constant 0 : index
    %0 = vector.load %arg1[%c0, %c0_0] : memref<16x32xf32, #tpu.memory_space<vmem>>, vector<16x32xf32>
    %1 = arith.truncf %0 : vector<16x32xf32> to vector<16x32xbf16>
    %c0_1 = arith.constant 0 : index
    %c0_2 = arith.constant 0 : index
    %2 = vector.load %arg2[%c0_1, %c0_2] : memref<32x128xbf16, #tpu.memory_space<vmem>>, vector<32x128xbf16>
    %cst = arith.constant dense<0.000000e+00> : vector<16x128xf32>
    %3 = tpu.matmul %1, %2, %cst {dimension_numbers = #tpu.dot_dimension_numbers<[1], [0], [0], [1], [0, 0, 1, 1], [], []>} : vector<16x32xbf16>, vector<32x128xbf16>, vector<16x128xf32> -> vector<16x128xf32>
    %c0_3 = arith.constant 0 : index
    %c0_4 = arith.constant 0 : index
    %4 = vector.load %arg3[%c0_3, %c0_4] : memref<1x128xf32, #tpu.memory_space<vmem>>, vector<1x128xf32>
    %5 = vector.broadcast %4 : vector<1x128xf32> to vector<16x128xf32>
    %6 = arith.addf %3, %5 : vector<16x128xf32>
    %7 = arith.truncf %6 : vector<16x128xf32> to vector<16x128xbf16>
    %c0_5 = arith.constant 0 : index
    %c0_6 = arith.constant 0 : index
    %8 = vector.load %arg4[%c0_5, %c0_6] : memref<128x384xbf16, #tpu.memory_space<vmem>>, vector<128x384xbf16>
    %cst_7 = arith.constant dense<0.000000e+00> : vector<16x384xf32>
    %9 = tpu.matmul %7, %8, %cst_7 {dimension_numbers = #tpu.dot_dimension_numbers<[1], [0], [0], [1], [0, 0, 1, 1], [], []>} : vector<16x128xbf16>, vector<128x384xbf16>, vector<16x384xf32> -> vector<16x384xf32>
    %c0_8 = arith.constant 0 : index
    %c0_9 = arith.constant 0 : index
    %10 = vector.load %arg5[%c0_8, %c0_9] : memref<1x384xf32, #tpu.memory_space<vmem>>, vector<1x384xf32>
    %11 = vector.broadcast %10 : vector<1x384xf32> to vector<16x384xf32>
    %12 = arith.addf %9, %11 : vector<16x384xf32>
    %13 = arith.truncf %12 : vector<16x384xf32> to vector<16x384xbf16>
    %c0_10 = arith.constant 0 : index
    %c0_11 = arith.constant 0 : index
    %14 = vector.load %arg6[%c0_10, %c0_11] : memref<16x384xbf16, #tpu.memory_space<vmem>>, vector<16x384xbf16>
    tpu.vector_store %arg6[%c0_10, %c0_11], %13 {strides = array<i32>} : memref<16x384xbf16, #tpu.memory_space<vmem>>, vector<16x384xbf16>,
    return
  }
  func.func @transform_0(%arg0: i32) -> (i32, i32) {
    %c0_i32 = arith.constant 0 : i32
    %c0_i32_0 = arith.constant 0 : i32
    return %arg0, %c0_i32 : i32, i32
  }
  func.func @transform_1(%arg0: i32) -> (i32, i32) {
    %c0_i32 = arith.constant 0 : i32
    %c0_i32_0 = arith.constant 0 : i32
    %c0_i32_1 = arith.constant 0 : i32
    return %c0_i32, %c0_i32_0 : i32, i32
  }
  func.func @transform_2(%arg0: i32) -> (i32, i32) {
    %c0_i32 = arith.constant 0 : i32
    %c0_i32_0 = arith.constant 0 : i32
    %c0_i32_1 = arith.constant 0 : i32
    return %c0_i32, %c0_i32_0 : i32, i32
  }
  func.func @transform_3(%arg0: i32) -> (i32, i32) {
    %c0_i32 = arith.constant 0 : i32
    %c0_i32_0 = arith.constant 0 : i32
    %c0_i32_1 = arith.constant 0 : i32
    return %c0_i32, %c0_i32_0 : i32, i32
  }
  func.func @transform_4(%arg0: i32) -> (i32, i32) {
    %c0_i32 = arith.constant 0 : i32
    %c0_i32_0 = arith.constant 0 : i32
    %c0_i32_1 = arith.constant 0 : i32
    return %c0_i32, %c0_i32_0 : i32, i32
  }
  func.func @transform_5(%arg0: i32) -> (i32, i32) {
    %c0_i32 = arith.constant 0 : i32
    %c0_i32_0 = arith.constant 0 : i32
    return %arg0, %c0_i32 : i32, i32
  }
}

module attributes {stable_mosaic.version = 11 : i64} {
  func.func @_attn_kernel(%arg0: i32, %arg1: i32, %arg2: memref<8x128xbf16, #tpu.memory_space<vmem>>, %arg3: memref<16x128xbf16, #tpu.memory_space<vmem>>, %arg4: memref<16x128xbf16, #tpu.memory_space<vmem>>, %arg5: memref<8x16xbf16, #tpu.memory_space<vmem>>, %arg6: memref<128x256xbf16, #tpu.memory_space<vmem>>, %arg7: memref<1x256xf32, #tpu.memory_space<vmem>>, %arg8: memref<8x128xf32, #tpu.memory_space<vmem>>, %arg9: memref<8x256xbf16, #tpu.memory_space<vmem>>, %arg10: memref<8x1xf32, #tpu.memory_space<vmem>>, %arg11: memref<8x1xf32, #tpu.memory_space<vmem>>) attributes {dimension_semantics = [#tpu.dimension_semantics<parallel>, #tpu.dimension_semantics<arbitrary>], iteration_bounds = array<i64: 1, 1>, scalar_prefetch = 0 : i64, scratch_operands = 2 : i64, tpu.core_type = #tpu.core_type<tc>, window_params = [{transform_indices = @transform_0, window_bounds = array<i64: 8, 128>}, {transform_indices = @transform_1, window_bounds = array<i64: 16, 128>}, {transform_indices = @transform_2, window_bounds = array<i64: 16, 128>}, {transform_indices = @transform_3, window_bounds = array<i64: 8, 16>}, {pipeline_mode = #tpu.pipeline_mode<synchronous>, transform_indices = @transform_4, window_bounds = array<i64: 128, 256>}, {pipeline_mode = #tpu.pipeline_mode<synchronous>, transform_indices = @transform_5, window_bounds = array<i64: 1, 256>}, {transform_indices = @transform_6, window_bounds = array<i64: 8, 128>}, {transform_indices = @transform_7, window_bounds = array<i64: 8, 256>}]} {
    %c0_i32 = arith.constant 0 : i32
    %0 = arith.cmpi eq, %arg1, %c0_i32 : i32
    %1 = arith.extui %0 : i1 to i32
    %c0_i32_0 = arith.constant 0 : i32
    %2 = arith.cmpi ne, %1, %c0_i32_0 : i32
    scf.if %2 {
      %cst_26 = arith.constant -1.000000e+30 : f32
      %39 = vector.broadcast %cst_26 : f32 to vector<8x1xf32>
      %c0_27 = arith.constant 0 : index
      %c0_28 = arith.constant 0 : index
      %40 = vector.load %arg10[%c0_27, %c0_28] : memref<8x1xf32, #tpu.memory_space<vmem>>, vector<8x1xf32>
      tpu.vector_store %arg10[%c0_27, %c0_28], %39 {strides = array<i32>} : memref<8x1xf32, #tpu.memory_space<vmem>>, vector<8x1xf32>,
      %cst_29 = arith.constant 0.000000e+00 : f32
      %41 = vector.broadcast %cst_29 : f32 to vector<8x1xf32>
      %c0_30 = arith.constant 0 : index
      %c0_31 = arith.constant 0 : index
      %42 = vector.load %arg11[%c0_30, %c0_31] : memref<8x1xf32, #tpu.memory_space<vmem>>, vector<8x1xf32>
      tpu.vector_store %arg11[%c0_30, %c0_31], %41 {strides = array<i32>} : memref<8x1xf32, #tpu.memory_space<vmem>>, vector<8x1xf32>,
      %cst_32 = arith.constant 0.000000e+00 : f32
      %43 = vector.broadcast %cst_32 : f32 to vector<8x128xf32>
      %c0_33 = arith.constant 0 : index
      %c0_34 = arith.constant 0 : index
      %44 = vector.load %arg8[%c0_33, %c0_34] : memref<8x128xf32, #tpu.memory_space<vmem>>, vector<8x128xf32>
      tpu.vector_store %arg8[%c0_33, %c0_34], %43 {strides = array<i32>} : memref<8x128xf32, #tpu.memory_space<vmem>>, vector<8x128xf32>,
    } else {
    }
    %c0 = arith.constant 0 : index
    %c0_1 = arith.constant 0 : index
    %3 = vector.load %arg2[%c0, %c0_1] : memref<8x128xbf16, #tpu.memory_space<vmem>>, vector<8x128xbf16>
    %c0_2 = arith.constant 0 : index
    %c0_3 = arith.constant 0 : index
    %4 = vector.load %arg3[%c0_2, %c0_3] : memref<16x128xbf16, #tpu.memory_space<vmem>>, vector<16x128xbf16>
    %cst = arith.constant dense<0.000000e+00> : vector<8x16xf32>
    %5 = tpu.matmul %3, %4, %cst {dimension_numbers = #tpu.dot_dimension_numbers<[1], [1], [0], [0], [0, 0, 1, 0], [], []>} : vector<8x128xbf16>, vector<16x128xbf16>, vector<8x16xf32> -> vector<8x16xf32>
    %cst_4 = arith.constant 0.00999999977 : f32
    %6 = vector.broadcast %cst_4 : f32 to vector<8x16xf32>
    %7 = arith.mulf %6, %5 : vector<8x16xf32>
    %8 = arith.maximumf %5, %7 : vector<8x16xf32>
    %c0_5 = arith.constant 0 : index
    %c0_6 = arith.constant 0 : index
    %9 = vector.load %arg5[%c0_5, %c0_6] : memref<8x16xbf16, #tpu.memory_space<vmem>>, vector<8x16xbf16>
    %10 = arith.extf %9 : vector<8x16xbf16> to vector<8x16xf32>
    %11 = arith.addf %8, %10 : vector<8x16xf32>
    %c0_7 = arith.constant 0 : index
    %c0_8 = arith.constant 0 : index
    %12 = vector.load %arg10[%c0_7, %c0_8] : memref<8x1xf32, #tpu.memory_space<vmem>>, vector<8x1xf32>
    %cst_9 = arith.constant dense<0xFF800000> : vector<8xf32>
    %13 = vector.multi_reduction <maximumf>, %11, %cst_9 [1] : vector<8x16xf32> to vector<8xf32>
    %14 = vector.shape_cast %13 : vector<8xf32> to vector<8x1xf32>
    %15 = arith.maximumf %12, %14 : vector<8x1xf32>
    %16 = arith.subf %12, %15 : vector<8x1xf32>
    %17 = math.exp %16 : vector<8x1xf32>
    %18 = vector.broadcast %15 : vector<8x1xf32> to vector<8x16xf32>
    %19 = arith.subf %11, %18 : vector<8x16xf32>
    %20 = math.exp %19 : vector<8x16xf32>
    %c0_10 = arith.constant 0 : index
    %c0_11 = arith.constant 0 : index
    %21 = vector.load %arg11[%c0_10, %c0_11] : memref<8x1xf32, #tpu.memory_space<vmem>>, vector<8x1xf32>
    %22 = arith.mulf %17, %21 : vector<8x1xf32>
    %cst_12 = arith.constant dense<0.000000e+00> : vector<8xf32>
    %23 = vector.multi_reduction <add>, %20, %cst_12 [1] : vector<8x16xf32> to vector<8xf32>
    %24 = vector.shape_cast %23 : vector<8xf32> to vector<8x1xf32>
    %25 = arith.addf %22, %24 : vector<8x1xf32>
    %c0_13 = arith.constant 0 : index
    %c0_14 = arith.constant 0 : index
    %26 = vector.load %arg11[%c0_13, %c0_14] : memref<8x1xf32, #tpu.memory_space<vmem>>, vector<8x1xf32>
    tpu.vector_store %arg11[%c0_13, %c0_14], %25 {strides = array<i32>} : memref<8x1xf32, #tpu.memory_space<vmem>>, vector<8x1xf32>,
    %c0_15 = arith.constant 0 : index
    %c0_16 = arith.constant 0 : index
    %27 = vector.load %arg8[%c0_15, %c0_16] : memref<8x128xf32, #tpu.memory_space<vmem>>, vector<8x128xf32>
    %28 = vector.broadcast %17 : vector<8x1xf32> to vector<8x128xf32>
    %29 = arith.mulf %28, %27 : vector<8x128xf32>
    %30 = arith.truncf %20 : vector<8x16xf32> to vector<8x16xbf16>
    %c0_17 = arith.constant 0 : index
    %c0_18 = arith.constant 0 : index
    %31 = vector.load %arg4[%c0_17, %c0_18] : memref<16x128xbf16, #tpu.memory_space<vmem>>, vector<16x128xbf16>
    %cst_19 = arith.constant dense<0.000000e+00> : vector<8x128xf32>
    %32 = tpu.matmul %30, %31, %cst_19 {dimension_numbers = #tpu.dot_dimension_numbers<[1], [0], [0], [1], [0, 0, 1, 1], [], []>} : vector<8x16xbf16>, vector<16x128xbf16>, vector<8x128xf32> -> vector<8x128xf32>
    %33 = arith.addf %29, %32 : vector<8x128xf32>
    %c0_20 = arith.constant 0 : index
    %c0_21 = arith.constant 0 : index
    %34 = vector.load %arg8[%c0_20, %c0_21] : memref<8x128xf32, #tpu.memory_space<vmem>>, vector<8x128xf32>
    tpu.vector_store %arg8[%c0_20, %c0_21], %33 {strides = array<i32>} : memref<8x128xf32, #tpu.memory_space<vmem>>, vector<8x128xf32>,
    %c0_22 = arith.constant 0 : index
    %c0_23 = arith.constant 0 : index
    %35 = vector.load %arg10[%c0_22, %c0_23] : memref<8x1xf32, #tpu.memory_space<vmem>>, vector<8x1xf32>
    tpu.vector_store %arg10[%c0_22, %c0_23], %15 {strides = array<i32>} : memref<8x1xf32, #tpu.memory_space<vmem>>, vector<8x1xf32>,
    %c0_i32_24 = arith.constant 0 : i32
    %36 = arith.cmpi eq, %arg1, %c0_i32_24 : i32
    %37 = arith.extui %36 : i1 to i32
    %c0_i32_25 = arith.constant 0 : i32
    %38 = arith.cmpi ne, %37, %c0_i32_25 : i32
    scf.if %38 {
      %c0_26 = arith.constant 0 : index
      %c0_27 = arith.constant 0 : index
      %39 = vector.load %arg10[%c0_26, %c0_27] : memref<8x1xf32, #tpu.memory_space<vmem>>, vector<8x1xf32>
      %cst_28 = arith.constant -5.000000e+29 : f32
      %40 = vector.broadcast %cst_28 : f32 to vector<8x1xf32>
      %41 = arith.cmpf ogt, %39, %40 : vector<8x1xf32>
      %c0_29 = arith.constant 0 : index
      %c0_30 = arith.constant 0 : index
      %42 = vector.load %arg8[%c0_29, %c0_30] : memref<8x128xf32, #tpu.memory_space<vmem>>, vector<8x128xf32>
      %c0_31 = arith.constant 0 : index
      %c0_32 = arith.constant 0 : index
      %43 = vector.load %arg11[%c0_31, %c0_32] : memref<8x1xf32, #tpu.memory_space<vmem>>, vector<8x1xf32>
      %44 = tpu.reciprocal %43 {approx = true} : vector<8x1xf32> -> vector<8x1xf32>
      %45 = vector.broadcast %44 : vector<8x1xf32> to vector<8x128xf32>
      %46 = arith.mulf %42, %45 : vector<8x128xf32>
      %cst_33 = arith.constant 0.000000e+00 : f32
      %47 = vector.broadcast %cst_33 : f32 to vector<8x128xf32>
      %48 = arith.maximumf %46, %47 : vector<8x128xf32>
      %cst_34 = arith.constant 0.000000e+00 : f32
      %49 = vector.shape_cast %41 : vector<8x1xi1> to vector<8x1xi1>
      %50 = vector.broadcast %49 : vector<8x1xi1> to vector<8x128xi1>
      %51 = vector.broadcast %cst_34 : f32 to vector<8x128xf32>
      %52 = arith.select %50, %48, %51 : vector<8x128xi1>, vector<8x128xf32>
      %c0_35 = arith.constant 0 : index
      %c0_36 = arith.constant 0 : index
      %53 = vector.load %arg8[%c0_35, %c0_36] : memref<8x128xf32, #tpu.memory_space<vmem>>, vector<8x128xf32>
      tpu.vector_store %arg8[%c0_35, %c0_36], %52 {strides = array<i32>} : memref<8x128xf32, #tpu.memory_space<vmem>>, vector<8x128xf32>,
      %54 = arith.truncf %52 : vector<8x128xf32> to vector<8x128xbf16>
      %c0_37 = arith.constant 0 : index
      %c0_38 = arith.constant 0 : index
      %55 = vector.load %arg6[%c0_37, %c0_38] : memref<128x256xbf16, #tpu.memory_space<vmem>>, vector<128x256xbf16>
      %cst_39 = arith.constant dense<0.000000e+00> : vector<8x256xf32>
      %56 = tpu.matmul %54, %55, %cst_39 {dimension_numbers = #tpu.dot_dimension_numbers<[1], [0], [0], [1], [0, 0, 1, 1], [], []>} : vector<8x128xbf16>, vector<128x256xbf16>, vector<8x256xf32> -> vector<8x256xf32>
      %c0_40 = arith.constant 0 : index
      %c0_41 = arith.constant 0 : index
      %57 = vector.load %arg7[%c0_40, %c0_41] : memref<1x256xf32, #tpu.memory_space<vmem>>, vector<1x256xf32>
      %58 = vector.broadcast %57 : vector<1x256xf32> to vector<8x256xf32>
      %59 = arith.addf %56, %58 : vector<8x256xf32>
      %60 = arith.truncf %59 : vector<8x256xf32> to vector<8x256xbf16>
      %c0_42 = arith.constant 0 : index
      %c0_43 = arith.constant 0 : index
      %61 = vector.load %arg9[%c0_42, %c0_43] : memref<8x256xbf16, #tpu.memory_space<vmem>>, vector<8x256xbf16>
      tpu.vector_store %arg9[%c0_42, %c0_43], %60 {strides = array<i32>} : memref<8x256xbf16, #tpu.memory_space<vmem>>, vector<8x256xbf16>,
    } else {
    }
    return
  }
  func.func @transform_0(%arg0: i32, %arg1: i32) -> (i32, i32) {
    %c0_i32 = arith.constant 0 : i32
    %c0_i32_0 = arith.constant 0 : i32
    return %arg0, %c0_i32 : i32, i32
  }
  func.func @transform_1(%arg0: i32, %arg1: i32) -> (i32, i32) {
    %c0_i32 = arith.constant 0 : i32
    %c0_i32_0 = arith.constant 0 : i32
    return %arg1, %c0_i32 : i32, i32
  }
  func.func @transform_2(%arg0: i32, %arg1: i32) -> (i32, i32) {
    %c1_i32 = arith.constant 1 : i32
    %c0_i32 = arith.constant 0 : i32
    return %arg1, %c1_i32 : i32, i32
  }
  func.func @transform_3(%arg0: i32, %arg1: i32) -> (i32, i32) {
    %c0_i32 = arith.constant 0 : i32
    return %arg0, %arg1 : i32, i32
  }
  func.func @transform_4(%arg0: i32, %arg1: i32) -> (i32, i32) {
    %c0_i32 = arith.constant 0 : i32
    %c0_i32_0 = arith.constant 0 : i32
    %c0_i32_1 = arith.constant 0 : i32
    return %c0_i32, %c0_i32_0 : i32, i32
  }
  func.func @transform_5(%arg0: i32, %arg1: i32) -> (i32, i32) {
    %c0_i32 = arith.constant 0 : i32
    %c0_i32_0 = arith.constant 0 : i32
    %c0_i32_1 = arith.constant 0 : i32
    return %c0_i32, %c0_i32_0 : i32, i32
  }
  func.func @transform_6(%arg0: i32, %arg1: i32) -> (i32, i32) {
    %c0_i32 = arith.constant 0 : i32
    %c0_i32_0 = arith.constant 0 : i32
    return %arg0, %c0_i32 : i32, i32
  }
  func.func @transform_7(%arg0: i32, %arg1: i32) -> (i32, i32) {
    %c0_i32 = arith.constant 0 : i32
    %c0_i32_0 = arith.constant 0 : i32
    return %arg0, %c0_i32 : i32, i32
  }
}

module attributes {stable_mosaic.version = 11 : i64} {
  func.func @_attn_kernel(%arg0: i32, %arg1: i32, %arg2: memref<16x128xbf16, #tpu.memory_space<vmem>>, %arg3: memref<8x128xbf16, #tpu.memory_space<vmem>>, %arg4: memref<8x128xbf16, #tpu.memory_space<vmem>>, %arg5: memref<16x8xbf16, #tpu.memory_space<vmem>>, %arg6: memref<16x128xf32, #tpu.memory_space<vmem>>, %arg7: memref<16x1xf32, #tpu.memory_space<vmem>>, %arg8: memref<16x1xf32, #tpu.memory_space<vmem>>) attributes {dimension_semantics = [#tpu.dimension_semantics<parallel>, #tpu.dimension_semantics<arbitrary>], iteration_bounds = array<i64: 1, 1>, scalar_prefetch = 0 : i64, scratch_operands = 2 : i64, tpu.core_type = #tpu.core_type<tc>, window_params = [{transform_indices = @transform_0, window_bounds = array<i64: 16, 128>}, {transform_indices = @transform_1, window_bounds = array<i64: 8, 128>}, {transform_indices = @transform_2, window_bounds = array<i64: 8, 128>}, {transform_indices = @transform_3, window_bounds = array<i64: 16, 8>}, {transform_indices = @transform_4, window_bounds = array<i64: 16, 128>}]} {
    %c0_i32 = arith.constant 0 : i32
    %0 = arith.cmpi eq, %arg1, %c0_i32 : i32
    %1 = arith.extui %0 : i1 to i32
    %c0_i32_0 = arith.constant 0 : i32
    %2 = arith.cmpi ne, %1, %c0_i32_0 : i32
    scf.if %2 {
      %cst_26 = arith.constant -1.000000e+30 : f32
      %39 = vector.broadcast %cst_26 : f32 to vector<16x1xf32>
      %c0_27 = arith.constant 0 : index
      %c0_28 = arith.constant 0 : index
      %40 = vector.load %arg7[%c0_27, %c0_28] : memref<16x1xf32, #tpu.memory_space<vmem>>, vector<16x1xf32>
      tpu.vector_store %arg7[%c0_27, %c0_28], %39 {strides = array<i32>} : memref<16x1xf32, #tpu.memory_space<vmem>>, vector<16x1xf32>,
      %cst_29 = arith.constant 0.000000e+00 : f32
      %41 = vector.broadcast %cst_29 : f32 to vector<16x1xf32>
      %c0_30 = arith.constant 0 : index
      %c0_31 = arith.constant 0 : index
      %42 = vector.load %arg8[%c0_30, %c0_31] : memref<16x1xf32, #tpu.memory_space<vmem>>, vector<16x1xf32>
      tpu.vector_store %arg8[%c0_30, %c0_31], %41 {strides = array<i32>} : memref<16x1xf32, #tpu.memory_space<vmem>>, vector<16x1xf32>,
      %cst_32 = arith.constant 0.000000e+00 : f32
      %43 = vector.broadcast %cst_32 : f32 to vector<16x128xf32>
      %c0_33 = arith.constant 0 : index
      %c0_34 = arith.constant 0 : index
      %44 = vector.load %arg6[%c0_33, %c0_34] : memref<16x128xf32, #tpu.memory_space<vmem>>, vector<16x128xf32>
      tpu.vector_store %arg6[%c0_33, %c0_34], %43 {strides = array<i32>} : memref<16x128xf32, #tpu.memory_space<vmem>>, vector<16x128xf32>,
    } else {
    }
    %c0 = arith.constant 0 : index
    %c0_1 = arith.constant 0 : index
    %3 = vector.load %arg2[%c0, %c0_1] : memref<16x128xbf16, #tpu.memory_space<vmem>>, vector<16x128xbf16>
    %c0_2 = arith.constant 0 : index
    %c0_3 = arith.constant 0 : index
    %4 = vector.load %arg3[%c0_2, %c0_3] : memref<8x128xbf16, #tpu.memory_space<vmem>>, vector<8x128xbf16>
    %cst = arith.constant dense<0.000000e+00> : vector<16x8xf32>
    %5 = tpu.matmul %3, %4, %cst {dimension_numbers = #tpu.dot_dimension_numbers<[1], [1], [0], [0], [0, 0, 1, 0], [], []>} : vector<16x128xbf16>, vector<8x128xbf16>, vector<16x8xf32> -> vector<16x8xf32>
    %cst_4 = arith.constant 0.00999999977 : f32
    %6 = vector.broadcast %cst_4 : f32 to vector<16x8xf32>
    %7 = arith.mulf %6, %5 : vector<16x8xf32>
    %8 = arith.maximumf %5, %7 : vector<16x8xf32>
    %c0_5 = arith.constant 0 : index
    %c0_6 = arith.constant 0 : index
    %9 = vector.load %arg5[%c0_5, %c0_6] : memref<16x8xbf16, #tpu.memory_space<vmem>>, vector<16x8xbf16>
    %10 = arith.extf %9 : vector<16x8xbf16> to vector<16x8xf32>
    %11 = arith.addf %8, %10 : vector<16x8xf32>
    %c0_7 = arith.constant 0 : index
    %c0_8 = arith.constant 0 : index
    %12 = vector.load %arg7[%c0_7, %c0_8] : memref<16x1xf32, #tpu.memory_space<vmem>>, vector<16x1xf32>
    %cst_9 = arith.constant dense<0xFF800000> : vector<16xf32>
    %13 = vector.multi_reduction <maximumf>, %11, %cst_9 [1] : vector<16x8xf32> to vector<16xf32>
    %14 = vector.shape_cast %13 : vector<16xf32> to vector<16x1xf32>
    %15 = arith.maximumf %12, %14 : vector<16x1xf32>
    %16 = arith.subf %12, %15 : vector<16x1xf32>
    %17 = math.exp %16 : vector<16x1xf32>
    %18 = vector.broadcast %15 : vector<16x1xf32> to vector<16x8xf32>
    %19 = arith.subf %11, %18 : vector<16x8xf32>
    %20 = math.exp %19 : vector<16x8xf32>
    %c0_10 = arith.constant 0 : index
    %c0_11 = arith.constant 0 : index
    %21 = vector.load %arg8[%c0_10, %c0_11] : memref<16x1xf32, #tpu.memory_space<vmem>>, vector<16x1xf32>
    %22 = arith.mulf %17, %21 : vector<16x1xf32>
    %cst_12 = arith.constant dense<0.000000e+00> : vector<16xf32>
    %23 = vector.multi_reduction <add>, %20, %cst_12 [1] : vector<16x8xf32> to vector<16xf32>
    %24 = vector.shape_cast %23 : vector<16xf32> to vector<16x1xf32>
    %25 = arith.addf %22, %24 : vector<16x1xf32>
    %c0_13 = arith.constant 0 : index
    %c0_14 = arith.constant 0 : index
    %26 = vector.load %arg8[%c0_13, %c0_14] : memref<16x1xf32, #tpu.memory_space<vmem>>, vector<16x1xf32>
    tpu.vector_store %arg8[%c0_13, %c0_14], %25 {strides = array<i32>} : memref<16x1xf32, #tpu.memory_space<vmem>>, vector<16x1xf32>,
    %c0_15 = arith.constant 0 : index
    %c0_16 = arith.constant 0 : index
    %27 = vector.load %arg6[%c0_15, %c0_16] : memref<16x128xf32, #tpu.memory_space<vmem>>, vector<16x128xf32>
    %28 = vector.broadcast %17 : vector<16x1xf32> to vector<16x128xf32>
    %29 = arith.mulf %28, %27 : vector<16x128xf32>
    %30 = arith.truncf %20 : vector<16x8xf32> to vector<16x8xbf16>
    %c0_17 = arith.constant 0 : index
    %c0_18 = arith.constant 0 : index
    %31 = vector.load %arg4[%c0_17, %c0_18] : memref<8x128xbf16, #tpu.memory_space<vmem>>, vector<8x128xbf16>
    %cst_19 = arith.constant dense<0.000000e+00> : vector<16x128xf32>
    %32 = tpu.matmul %30, %31, %cst_19 {dimension_numbers = #tpu.dot_dimension_numbers<[1], [0], [0], [1], [0, 0, 1, 1], [], []>} : vector<16x8xbf16>, vector<8x128xbf16>, vector<16x128xf32> -> vector<16x128xf32>
    %33 = arith.addf %29, %32 : vector<16x128xf32>
    %c0_20 = arith.constant 0 : index
    %c0_21 = arith.constant 0 : index
    %34 = vector.load %arg6[%c0_20, %c0_21] : memref<16x128xf32, #tpu.memory_space<vmem>>, vector<16x128xf32>
    tpu.vector_store %arg6[%c0_20, %c0_21], %33 {strides = array<i32>} : memref<16x128xf32, #tpu.memory_space<vmem>>, vector<16x128xf32>,
    %c0_22 = arith.constant 0 : index
    %c0_23 = arith.constant 0 : index
    %35 = vector.load %arg7[%c0_22, %c0_23] : memref<16x1xf32, #tpu.memory_space<vmem>>, vector<16x1xf32>
    tpu.vector_store %arg7[%c0_22, %c0_23], %15 {strides = array<i32>} : memref<16x1xf32, #tpu.memory_space<vmem>>, vector<16x1xf32>,
    %c0_i32_24 = arith.constant 0 : i32
    %36 = arith.cmpi eq, %arg1, %c0_i32_24 : i32
    %37 = arith.extui %36 : i1 to i32
    %c0_i32_25 = arith.constant 0 : i32
    %38 = arith.cmpi ne, %37, %c0_i32_25 : i32
    scf.if %38 {
      %c0_26 = arith.constant 0 : index
      %c0_27 = arith.constant 0 : index
      %39 = vector.load %arg7[%c0_26, %c0_27] : memref<16x1xf32, #tpu.memory_space<vmem>>, vector<16x1xf32>
      %cst_28 = arith.constant -5.000000e+29 : f32
      %40 = vector.broadcast %cst_28 : f32 to vector<16x1xf32>
      %41 = arith.cmpf ogt, %39, %40 : vector<16x1xf32>
      %c0_29 = arith.constant 0 : index
      %c0_30 = arith.constant 0 : index
      %42 = vector.load %arg6[%c0_29, %c0_30] : memref<16x128xf32, #tpu.memory_space<vmem>>, vector<16x128xf32>
      %c0_31 = arith.constant 0 : index
      %c0_32 = arith.constant 0 : index
      %43 = vector.load %arg8[%c0_31, %c0_32] : memref<16x1xf32, #tpu.memory_space<vmem>>, vector<16x1xf32>
      %44 = tpu.reciprocal %43 {approx = true} : vector<16x1xf32> -> vector<16x1xf32>
      %45 = vector.broadcast %44 : vector<16x1xf32> to vector<16x128xf32>
      %46 = arith.mulf %42, %45 : vector<16x128xf32>
      %cst_33 = arith.constant 0.000000e+00 : f32
      %47 = vector.broadcast %cst_33 : f32 to vector<16x128xf32>
      %48 = arith.maximumf %46, %47 : vector<16x128xf32>
      %cst_34 = arith.constant 0.000000e+00 : f32
      %49 = vector.shape_cast %41 : vector<16x1xi1> to vector<16x1xi1>
      %50 = vector.broadcast %49 : vector<16x1xi1> to vector<16x128xi1>
      %51 = vector.broadcast %cst_34 : f32 to vector<16x128xf32>
      %52 = arith.select %50, %48, %51 : vector<16x128xi1>, vector<16x128xf32>
      %c0_35 = arith.constant 0 : index
      %c0_36 = arith.constant 0 : index
      %53 = vector.load %arg6[%c0_35, %c0_36] : memref<16x128xf32, #tpu.memory_space<vmem>>, vector<16x128xf32>
      tpu.vector_store %arg6[%c0_35, %c0_36], %52 {strides = array<i32>} : memref<16x128xf32, #tpu.memory_space<vmem>>, vector<16x128xf32>,
    } else {
    }
    return
  }
  func.func @transform_0(%arg0: i32, %arg1: i32) -> (i32, i32) {
    %c2_i32 = arith.constant 2 : i32
    %c0_i32 = arith.constant 0 : i32
    return %arg0, %c2_i32 : i32, i32
  }
  func.func @transform_1(%arg0: i32, %arg1: i32) -> (i32, i32) {
    %c0_i32 = arith.constant 0 : i32
    %c0_i32_0 = arith.constant 0 : i32
    return %arg1, %c0_i32 : i32, i32
  }
  func.func @transform_2(%arg0: i32, %arg1: i32) -> (i32, i32) {
    %c1_i32 = arith.constant 1 : i32
    %c0_i32 = arith.constant 0 : i32
    return %arg1, %c1_i32 : i32, i32
  }
  func.func @transform_3(%arg0: i32, %arg1: i32) -> (i32, i32) {
    %c0_i32 = arith.constant 0 : i32
    return %arg0, %arg1 : i32, i32
  }
  func.func @transform_4(%arg0: i32, %arg1: i32) -> (i32, i32) {
    %c0_i32 = arith.constant 0 : i32
    %c0_i32_0 = arith.constant 0 : i32
    return %arg0, %c0_i32 : i32, i32
  }
}

</mosaic_0001>

<bundles_post_ra>
// kernel: _lambda_.4
= control target key start
LH: loop header
LB: loop body
LE: loop exit
PB: predicated region body
PF: predicated region fallthrough
CT: control target
= control target key end

     0   :  { %vm40_vm0 = vcmask 1043456   ;;  %v109_v0 = vmov 0.0   ;;  %vm110_vm1 = vmmov 0   ;;  %vm36_vm2 = vcmask 195584   ;;  %s146_s1 = inlined_call_operand.vmem [shape: bf16[24,128], index: 1, kind: input, shape index: {}]   ;;  %s147_s0 = inlined_call_operand.vmem [shape: f32[8,24], index: 0, kind: input, shape index: {}]   ;;  %s148_s2 = inlined_call_operand.vmem [shape: f32[1,128], index: 2, kind: input, shape index: {}]   ;;  %s149_s3 = inlined_call_operand.vmem [shape: bf16[8,128], index: 3, kind: output, shape index: {}]  }
   0x1   :  { %97 = vmatprep.subr.bf16.mxu0 %v109_v0  ;;  %v107_v1 = vld [vmem:[%s146_s1 + $0x8] ss:$0 sps:$4 sm:$0xff]   ;;  %101 = vmatprep.mubr.msk.bf16.mxu0 %vm110_vm1, %v109_v0  ;;  %v108_v3 = vld [vmem:[%s146_s1] sm:$0xff]  }
   0x2   :  { %v42_v2 = vsel %vm40_vm0, %v107_v1, 0  ;;  %v15_v4 = vld [vmem:[%s147_s0] sm:$0xff] }
   0x3   :  { %98 = vmatpush3.bf16.msra.mxu0 %v42_v2  ;;  %v16_v5 = vpack.c.bf16 %v15_v4, %v15_v4  ;;  %v90_v6 = vld [vmem:[%s148_s2] ss:$0 sm:$0xff] }
   0x4   :  { %99 = vmatprep.subr.bf16.mxu0 %v109_v0 }
   0x7   :  { %100 = vmatpush3.bf16.msra.mxu0 %v108_v3 }
   0xa   :  { %102 = vmatmul.mubr.msk.bf16.vlgmr.msra.gmra.mxu0 %vm36_vm2, %v16_v5 }
  0xca   :  { %v78_v7 = vpop.f32.mrf.mxu0 }
  0xcb   :  { %v79_v8 = vadd.f32 %v90_v6, %v78_v7 }
  0xcc   :  { %v103_v9 = vpop.f32.mrf.mxu0 }
  0xcd   :  { %v84_v10 = vpack.c.bf16 %v79_v8, %v79_v8 }
  0xce   :  { %v81_v11 = vpop.f32.mrf.mxu0 }
  0xcf   :  { %85 = vst [vmem:[%s149_s3] sm:$0xf] %v84_v10 }
  0xd0   :  { %v104_v12 = vpop.f32.mrf.mxu0 }

// kernel: _lambda_.5
= control target key start
LH: loop header
LB: loop body
LE: loop exit
PB: predicated region body
PF: predicated region fallthrough
CT: control target
= control target key end

     0   :  { %v495_v0 = vmov 0.0   ;;  %vm496_vm0 = vmmov 0   ;;  %vm47_vm1 = vcmask 261120   ;;  %v497_v30 = vmov 0   ;;  %s644_s1 = inlined_call_operand.vmem [shape: bf16[32,128], index: 1, kind: input, shape index: {}]   ;;  %s645_s0 = inlined_call_operand.vmem [shape: f32[16,32], index: 0, kind: input, shape index: {}]   ;;  %s646_s3 = inlined_call_operand.vmem [shape: bf16[128,384], index: 3, kind: input, shape index: {}]   ;;  %s647_s2 = inlined_call_operand.vmem [shape: f32[1,128], index: 2, kind: input, shape index: {}]   ;;  %s648_s4 = inlined_call_operand.vmem [shape: f32[1,384], index: 4, kind: input, shape index: {}]   ;;  %s649_s5 = inlined_call_operand.vmem [shape: bf16[16,384], index: 5, kind: output, shape index: {}]  }
   0x1   :  { %430 = vmatprep.subr.bf16.mxu0 %v495_v0  ;;  %v461_v1 = vld [vmem:[%s644_s1 + $0x8] sm:$0xff]   ;;  %434 = vmatprep.mubr.msk.bf16.mxu0 %vm496_vm0, %v495_v0  ;;  %v462_v2 = vld [vmem:[%s644_s1] sm:$0xff]   ;;  %v466_v7 = vld [vmem:[%s646_s3 + $0xb0] ss:$12 sps:$4 sm:$0xff]   ;;  %v127_v39 = vlaneseq }
   0x2   :  { %431 = vmatpush3.bf16.msra.mxu0 %v461_v1  ;;  %v21_v3 = vld [vmem:[%s645_s0] sm:$0xff]  ;;  %v22_v4 = vld [vmem:[%s645_s0 + $0x8] sm:$0xff]  ;;  %v469_v10 = vld [vmem:[%s646_s3 + $0x90] ss:$12 sps:$4 sm:$0xff]   ;;  %302 = vmatprep.mubr.bf16.mxu1 %v497_v30 }
   0x3   :  { %432 = vmatprep.subr.bf16.mxu0 %v495_v0  ;;  %v463_v5 = vld [vmem:[%s646_s3 + $0xac] ss:$12 sps:$4 sm:$0xff]   ;;  %v465_v6 = vld [vmem:[%s646_s3 + $0xa8] ss:$12 sps:$4 sm:$0xff]   ;;  %v23_v8 = vpack.c.bf16 %v22_v4, %v21_v3  ;;  %v475_v14 = vld [vmem:[%s646_s3 + $0x64] ss:$12 sps:$4 sm:$0xff]  }
   0x4   :  { %270 = vmatprep.subr.bf16.mxu1 %v463_v5  ;;  %v467_v9 = vld [vmem:[%s646_s3 + $0x94] ss:$12 sps:$4 sm:$0xff]   ;;  %v471_v11 = vld [vmem:[%s646_s3 + $0x7c] ss:$12 sps:$4 sm:$0xff]   ;;  %v470_v12 = vld [vmem:[%s646_s3 + $0x98] ss:$12 sps:$4 sm:$0xff]  }
   0x5   :  { %271 = vmatpush1.bf16.msra.mxu1 %v465_v6  ;;  %v473_v13 = vld [vmem:[%s646_s3 + $0x78] ss:$12 sps:$4 sm:$0xff]   ;;  %v474_v15 = vld [vmem:[%s646_s3 + $0x80] ss:$12 sps:$4 sm:$0xff]   ;;  %v478_v18 = vld [vmem:[%s646_s3 + $0x68] ss:$12 sps:$4 sm:$0xff]  }
   0x6   :  { %433 = vmatpush3.bf16.msra.mxu0 %v462_v2  ;;  %272 = vmatprep.subr.bf16.mxu1 %v467_v9  ;;  %v477_v16 = vld [vmem:[%s646_s3 + $0x60] ss:$12 sps:$4 sm:$0xff]   ;;  %v481_v19 = vld [vmem:[%s646_s3 + $0x48] ss:$12 sps:$4 sm:$0xff]   ;;  %v482_v21 = vld [vmem:[%s646_s3 + $0x50] ss:$12 sps:$4 sm:$0xff]  }
   0x7   :  { %438 = vmatprep.subr.bf16.mxu0 %v495_v0  ;;  %v479_v17 = vld [vmem:[%s646_s3 + $0x4c] ss:$12 sps:$4 sm:$0xff]   ;;  %v483_v20 = vld [vmem:[%s646_s3 + $0x34] ss:$12 sps:$4 sm:$0xff]   ;;  %v485_v22 = vld [vmem:[%s646_s3 + $0x30] ss:$12 sps:$4 sm:$0xff]  }
   0x8   :  { %v486_v23 = vld [vmem:[%s646_s3 + $0x38] ss:$12 sps:$4 sm:$0xff]   ;;  %v487_v24 = vld [vmem:[%s646_s3 + $0x1c] ss:$12 sps:$4 sm:$0xff]   ;;  %v490_v26 = vld [vmem:[%s646_s3 + $0x20] ss:$12 sps:$4 sm:$0xff]  }
   0x9   :  { %435 = vmatmul.mubr.msk.bf16.vlgmr.msra.gmra.mxu0 %vm47_vm1, %v23_v8  ;;  %273 = vmatpush1.bf16.msra.mxu1 %v469_v10  ;;  %v489_v25 = vld [vmem:[%s646_s3 + $0x18] ss:$12 sps:$4 sm:$0xff]   ;;  %v493_v28 = vld [vmem:[%s646_s3] ss:$12 sps:$4 sm:$0xff]   ;;  %v494_v29 = vld [vmem:[%s646_s3 + $0x8] ss:$12 sps:$4 sm:$0xff]  }
   0xa   :  { %439 = vmatpush3.bf16.msra.mxu0 %v466_v7  ;;  %274 = vmatprep.subr.bf16.mxu1 %v471_v11  ;;  %v491_v27 = vld [vmem:[%s646_s3 + $0x4] ss:$12 sps:$4 sm:$0xff]   ;;  %v382_v32 = vld [vmem:[%s647_s2] ss:$0 sm:$0xff]  ;;  %v128_v40 = vshrl.u32 %v127_v39, 7 }
   0xb   :  { %440 = vmatprep.subr.bf16.mxu0 %v495_v0  ;;  %454 = vmatprep.mubr.msk.bf16.mxu0 %vm496_vm0, %v495_v0  ;;  %v125_v42 = vld [vmem:[%s648_s4] sm:$0x7] }
   0xc   :  { %v137_v41 = vsub.s32 2, %v128_v40  ;;  %v129_v43 = vsub.s32 0, %v128_v40  ;;  %v133_v44 = vsub.s32 1, %v128_v40 }
   0xd   :  { %275 = vmatpush1.bf16.msra.mxu1 %v473_v13 }
   0xe   :  { %441 = vmatpush3.bf16.msra.mxu0 %v470_v12  ;;  %276 = vmatprep.subr.bf16.mxu1 %v475_v14  ;;  %v138_v45 = vrot.slane %v125_v42, %v137_v41  ;;  %v130_v46 = vrot.slane %v125_v42, %v129_v43  ;;  %v134_v47 = vrot.slane %v125_v42, %v133_v44 }
   0xf   :  { %442 = vmatprep.subr.bf16.mxu0 %v495_v0 }
  0x11   :  { %277 = vmatpush1.bf16.msra.mxu1 %v477_v16 }
  0x12   :  { %443 = vmatpush3.bf16.msra.mxu0 %v474_v15  ;;  %278 = vmatprep.subr.bf16.mxu1 %v479_v17 }
  0x13   :  { %444 = vmatprep.subr.bf16.mxu0 %v495_v0 }
  0x15   :  { %279 = vmatpush1.bf16.msra.mxu1 %v481_v19 }
  0x16   :  { %445 = vmatpush3.bf16.msra.mxu0 %v478_v18  ;;  %280 = vmatprep.subr.bf16.mxu1 %v483_v20 }
  0x17   :  { %446 = vmatprep.subr.bf16.mxu0 %v495_v0 }
  0x19   :  { %281 = vmatpush1.bf16.msra.mxu1 %v485_v22 }
  0x1a   :  { %447 = vmatpush3.bf16.msra.mxu0 %v482_v21  ;;  %282 = vmatprep.subr.bf16.mxu1 %v487_v24 }
  0x1b   :  { %448 = vmatprep.subr.bf16.mxu0 %v495_v0 }
  0x1d   :  { %283 = vmatpush1.bf16.msra.mxu1 %v489_v25 }
  0x1e   :  { %449 = vmatpush3.bf16.msra.mxu0 %v486_v23  ;;  %284 = vmatprep.subr.bf16.mxu1 %v491_v27 }
  0x1f   :  { %450 = vmatprep.subr.bf16.mxu0 %v495_v0 }
  0x21   :  { %285 = vmatpush1.bf16.msra.mxu1 %v493_v28 }
  0x22   :  { %451 = vmatpush3.bf16.msra.mxu0 %v490_v26 }
  0x23   :  { %452 = vmatprep.subr.bf16.mxu0 %v495_v0 }
  0x26   :  { %453 = vmatpush3.bf16.msra.mxu0 %v494_v29 }
  0xc9   :  { %v85_v31 = vpop.f32.mrf.mxu0 }
  0xca   :  { %v86_v35 = vadd.f32 %v382_v32, %v85_v31 }
  0xcb   :  { %v436_v33 = vpop.f32.mrf.mxu0 }
  0xcd   :  { %v88_v34 = vpop.f32.mrf.mxu0 }
  0xce   :  { %v89_v36 = vadd.f32 %v382_v32, %v88_v34 }
  0xcf   :  { %v437_v37 = vpop.f32.mrf.mxu0 }
  0xd0   :  { %v92_v38 = vpack.c.bf16 %v89_v36, %v86_v35 }
  0xd2   :  { %303 = vmatmul.mubr.bf16.vlgmr.msra.gmra.mxu1 %v92_v38  ;;  %455 = vmatmul.mubr.bf16.vlgmr.msra.gmra.mxu0 %v92_v38 }
 0x192   :  { %v304_v48 = vpop.f32.mrf.mxu1  ;;  %v347_v49 = vpop.f32.mrf.mxu0 }
 0x193   :  { %v348_v50 = vadd.f32 %v347_v49, %v138_v45  ;;  %v305_v53 = vadd.f32 %v304_v48, %v130_v46 }
 0x194   :  { %v306_v51 = vpop.f32.mrf.mxu1  ;;  %v456_v52 = vpop.f32.mrf.mxu0 }
 0x195   :  { %v415_v54 = vpack.c.bf16 %v348_v50, %v348_v50  ;;  %v307_v55 = vadd.f32 %v306_v51, %v134_v47 }
 0x196   :  { %v308_v56 = vpop.f32.mrf.mxu1  ;;  %v350_v57 = vpop.f32.mrf.mxu0 }
 0x197   :  { %375 = vst [vmem:[%s649_s5 + $0x8] sm:$0xf] %v415_v54  ;;  %v414_v58 = vpack.c.bf16 %v307_v55, %v305_v53  ;;  %v351_v59 = vadd.f32 %v350_v57, %v138_v45  ;;  %v309_v62 = vadd.f32 %v308_v56, %v130_v46 }
 0x198   :  { %v310_v60 = vpop.f32.mrf.mxu1  ;;  %v457_v61 = vpop.f32.mrf.mxu0 }
 0x199   :  { %374 = vst [vmem:[%s649_s5] sm:$0xff] %v414_v58  ;;  %v417_v63 = vpack.c.bf16 %v351_v59, %v351_v59  ;;  %v311_v0 = vadd.f32 %v310_v60, %v134_v47 }
 0x19b   :  { %377 = vst [vmem:[%s649_s5 + $0x14] sm:$0xf] %v417_v63  ;;  %v416_v1 = vpack.c.bf16 %v311_v0, %v309_v62 }
 0x19d   :  { %376 = vst [vmem:[%s649_s5 + $0xc] sm:$0xff] %v416_v1 }

// kernel: _lambda_.6
= control target key start
LH: loop header
LB: loop body
LE: loop exit
PB: predicated region body
PF: predicated region fallthrough
CT: control target
= control target key end

     0   :  { %v581_v2 = vmov 0.0   ;;  %vm582_vm0 = vmmov 0   ;;  %s712_s0 = inlined_call_operand.vmem [shape: bf16[8,128], index: 0, kind: input, shape index: {}]   ;;  %s713_s1 = inlined_call_operand.vmem [shape: bf16[16,384], index: 1, kind: input, shape index: {}, may-alias: {1,2}]   ;;  %s714_s2 = inlined_call_operand.vmem [shape: bf16[16,384], index: 2, kind: input, shape index: {}, may-alias: {1,2}]   ;;  %s715_s3 = inlined_call_operand.vmem [shape: bf16[8,16], index: 3, kind: input, shape index: {}]   ;;  %s716_s4 = inlined_call_operand.vmem [shape: bf16[128,256], index: 4, kind: input, shape index: {}]   ;;  %s717_s5 = inlined_call_operand.vmem [shape: f32[1,256], index: 5, kind: input, shape index: {}]   ;;  %s718_s6 = inlined_call_operand.hbm [shape: f32[8,128], index: 6, kind: output, shape index: {0}]   ;;  %s719_s7 = inlined_call_operand.vmem [shape: bf16[8,256], index: 7, kind: output, shape index: {1}]  }
   0x1   :  { %v34_v0 = vld [vmem:[%s713_s1] sm:$0xf]  ;;  %v36_v1 = vld [vmem:[%s713_s1 + $0xc] sm:$0xf]  ;;  %508 = vmatprep.subr.bf16.mxu0 %v581_v2  ;;  %510 = vmatprep.mubr.msk.bf16.mxu0 %vm582_vm0, %v581_v2 }
   0x2   :  { %35 = vst [vmem:[#allocation4] sm:$0xf] %v34_v0  ;;  %37 = vst [vmem:[#allocation4 + $0x4] sm:$0xf] %v36_v1 }
   0x3   :  { %13 = vsyncpa [#allocation7], 0  ;;  %v130_v4 = vld [vmem:[%s712_s0] sm:$0xf]  ;;  %vm126_vm1 = vcmask 7168   ;;  %vm185_vm2 = vcmask 130048  }
   0x4   :  { %v583_v5 = vmov -1e+30   ;;  %128 = vst.msk [vmem:[#allocation3] sm:$0xff] %vm126_vm1, %v581_v2  ;;  %v181_v6 = vld [vmem:[%s715_s3] sm:$0xf]  ;;  %v584_v16 = vmov 0  }
   0x5   :  { %127 = vst.msk [vmem:[#allocation2] sm:$0xff] %vm126_vm1, %v583_v5  ;;  %v182_v9 = vunpack.c.l.bf16 %v181_v6  ;;  %525 = vset.pattern.permute.xlu0 %v584_v16  ;;  %526 = vset.pattern.permute.xlu1 %v584_v16  ;;  %v478_v21 = vld [vmem:[%s714_s2 + $0x4] sm:$0xf]  ;;  %v479_v22 = vld [vmem:[%s714_s2 + $0x10] sm:$0xf] }
   0x6   :  { %434 = vmatprep.mubr.bf16.mxu1 %v584_v16  ;;  %83 = vst [vmem:[#allocation5] sm:$0xf] %v478_v21  ;;  %85 = vst [vmem:[#allocation5 + $0x4] sm:$0xf] %v479_v22  ;;  %v529_v32 = vld [vmem:[%s716_s4 + $0x74] ss:$8 sps:$4 sm:$0xff]  }
   0x7   :  { %v531_v33 = vld [vmem:[%s716_s4 + $0x70] ss:$8 sps:$4 sm:$0xff]   ;;  %v532_v34 = vld [vmem:[%s716_s4 + $0x64] ss:$8 sps:$4 sm:$0xff]   ;;  %402 = vmatprep.subr.bf16.mxu1 %v529_v32  ;;  %v534_v35 = vld [vmem:[%s716_s4 + $0x60] ss:$8 sps:$4 sm:$0xff]  }
   0x8   :  { %403 = vmatpush1.bf16.msra.mxu1 %v531_v33  ;;  %v535_v36 = vld [vmem:[%s716_s4 + $0x54] ss:$8 sps:$4 sm:$0xff]   ;;  %v537_v37 = vld [vmem:[%s716_s4 + $0x50] ss:$8 sps:$4 sm:$0xff]   ;;  %v538_v38 = vld [vmem:[%s716_s4 + $0x44] ss:$8 sps:$4 sm:$0xff]  }
   0x9   :  { %v527_v3 = vld [vmem:[#allocation4] sm:$0xff]   ;;  %404 = vmatprep.subr.bf16.mxu1 %v532_v34  ;;  %v540_v39 = vld [vmem:[%s716_s4 + $0x40] ss:$8 sps:$4 sm:$0xff]   ;;  %v544_v42 = vld [vmem:[%s716_s4 + $0x24] ss:$8 sps:$4 sm:$0xff]  }
   0xa   :  { %509 = vmatpush3.bf16.xpose.msra.mxu0 %v527_v3  ;;  %v541_v40 = vld [vmem:[%s716_s4 + $0x34] ss:$8 sps:$4 sm:$0xff]   ;;  %v543_v41 = vld [vmem:[%s716_s4 + $0x30] ss:$8 sps:$4 sm:$0xff]   ;;  %v546_v43 = vld [vmem:[%s716_s4 + $0x20] ss:$8 sps:$4 sm:$0xff]  }
   0xb   :  { %514 = vmatprep.subr.bf16.mxu0 %v581_v2  ;;  %v547_v44 = vld [vmem:[%s716_s4 + $0x14] ss:$8 sps:$4 sm:$0xff]   ;;  %v549_v45 = vld [vmem:[%s716_s4 + $0x10] ss:$8 sps:$4 sm:$0xff]   ;;  %v201_v46 = vld [vmem:[#allocation3] sm:$0xff] }
   0xc   :  { %v184_v17 = vld [vmem:[#allocation2] sm:$0xff]  ;;  %405 = vmatpush1.bf16.msra.mxu1 %v534_v35 }
   0xd   :  { %v528_v23 = vld [vmem:[#allocation5] sm:$0xff]   ;;  %406 = vmatprep.subr.bf16.mxu1 %v535_v36  ;;  %v550_v52 = vld [vmem:[%s716_s4 + $0x4] ss:$8 sps:$4 sm:$0xff]   ;;  %v552_v53 = vld [vmem:[%s716_s4] ss:$8 sps:$4 sm:$0xff]   ;;  %s585_s4 = smov [#allocation6]  }
   0xe   :  { %s458_s14 = sshll.u32 %s585_s4, 4  ;;  %s459_s14 = int_to_ptr.vmem [resolvable:$true] %s458_s14 }
   0xf   :  { %s559_s15 = scalar_lea.vmem %s459_s14, 128  ;;  %p564_p1 = scmp.lt.s32.totalorder %s459_s14, %s459_s14 }
  0x10   :  { %407 = vmatpush1.bf16.msra.mxu1 %v537_v37  ;;  %p560_p0 = scmp.ne.s32.totalorder %s459_s14, %s559_s15  ;;  %p565_p2 = scmp.lt.s32.totalorder %s559_s15, %s559_s15 }
  0x11   :  { %511 = vmatmul.mubr.bf16.vlgmr.msra.gmra.mxu0 %v130_v4  ;;  %408 = vmatprep.subr.bf16.mxu1 %v538_v38 }
  0x12   :  { %516 = vmatprep.mubr.msk.bf16.mxu0 %vm582_vm0, %v581_v2  ;;  %515 = vmatpush3.bf16.msra.mxu0 %v528_v23  ;;  %p566_p3 = por %p565_p2, %p564_p1 }
  0x14   :  { %409 = vmatpush1.bf16.msra.mxu1 %v540_v39  ;;  %p567_p4 = pnand %p566_p3, %p560_p0 }
  0x15   :  { %410 = vmatprep.subr.bf16.mxu1 %v541_v40 }
  0x18   :  { %411 = vmatpush1.bf16.msra.mxu1 %v543_v41 }
  0x19   :  { %412 = vmatprep.subr.bf16.mxu1 %v544_v42 }
  0x1c   :  { %413 = vmatpush1.bf16.msra.mxu1 %v546_v43 }
  0x1d   :  { %414 = vmatprep.subr.bf16.mxu1 %v547_v44 }
  0x20   :  { %415 = vmatpush1.bf16.msra.mxu1 %v549_v45 }
  0x21   :  { %416 = vmatprep.subr.bf16.mxu1 %v550_v52 }
  0x24   :  { %417 = vmatpush1.bf16.msra.mxu1 %v552_v53 }
  0xd1   :  { %v173_v7 = vpop.f32.mrf.mxu0 }
  0xd2   :  { %v179_v8 = vmul.f32 0.01, %v173_v7 }
  0xd3   :  { %v512_v10 = vpop.f32.mrf.mxu0 }
  0xd4   :  { %v180_v11 = vmax.f32 %v173_v7, %v179_v8 }
  0xd5   :  { %v176_v12 = vpop.f32.mrf.mxu0 }
  0xd6   :  { %v183_v13 = vadd.f32 %v182_v9, %v180_v11 }
  0xd7   :  { %v513_v14 = vpop.f32.mrf.mxu0 }
  0xd8   :  { %v186_v15 = vsel %vm185_vm2, %v183_v13, -inf }
  0xd9   :  { %187 = vmax.xlane.f32.xlu0 %v186_v15 }
 0x162   :  { %v188_v18 = vpop.xlane.xlu0 %187 }
 0x163   :  { %v189_v19 = vmax.f32 %v184_v17, %v188_v18 }
 0x165   :  { %v190_v20 = vsub.f32 %v184_v17, %v189_v19  ;;  %270 = vst.msk [vmem:[#allocation2] sm:$0xff] %vm126_vm1, %v189_v19  ;;  %195 = vperm.xlu0 %525, %v189_v19  }
 0x167   :  { %v191_v28 = vmul.f32 1.442695, %v190_v20 }
 0x16c   :  { %v274_v51 = vld [vmem:[#allocation2] sm:$0xff] }
 0x16d   :  { %vm275_vm3 = vcmp.gt.f32.partialorder %v274_v51, -5e+29 }
 0x16e   :  { %v286_v55 = vsel %vm275_vm3, 1, %v584_v16 }
 0x1e0   :  { %v196_v24 = vpop.permute.xlu0 %195 }
 0x1e1   :  { %v198_v25 = vsub.f32 %v183_v13, %v196_v24 }
 0x1e3   :  { %v199_v26 = vmul.f32 1.442695, %v198_v25 }
 0x1e5   :  { %553 = vpow2.f32 %v199_v26 }
 0x1e6   :  { %555 = vpow2.f32 %v191_v28 }
 0x1f2   :  { %v554_v27 = vpop.eup %553 }
 0x1f3   :  { %v203_v29 = vsel %vm185_vm2, %v554_v27, 0.0  ;;  %v216_v30 = vpack.c.bf16 %v554_v27, %v554_v27  ;;  %v556_v31 = vpop.eup %555 }
 0x1f4   :  { %204 = vadd.xlane.f32.xlu1 %v203_v29  ;;  %v202_v47 = vmul.f32 %v556_v31, %v201_v46 }
 0x1f5   :  { %517 = vmatmul.mubr.msk.bf16.vlgmr.msra.gmra.mxu0 %vm185_vm2, %v216_v30 }
 0x205   :  { %212 = vperm.xlu1 %526, %v556_v31  }
 0x27d   :  { %v205_v48 = vpop.xlane.xlu1 %204 }
 0x27e   :  { %v206_v49 = vadd.f32 %v205_v48, %v202_v47 }
 0x280   :  { %208 = vst.msk [vmem:[#allocation3] sm:$0xff] %vm126_vm1, %v206_v49 }
 0x281   :  { %v213_v60 = vpop.permute.xlu1 %212 }
 0x282   :  { %v215_v61 = vmul.f32 0.0, %v213_v60 }
 0x287   :  { %v277_v50 = vld [vmem:[#allocation3] sm:$0xff] }
 0x288   :  { %557 = vrcp.f32 %v277_v50 }
 0x295   :  { %v558_v54 = vpop.eup %557 }
 0x296   :  { %281 = vperm.xlu1 %526, %v558_v54  }
 0x29a   :  { %288 = vperm.xlu1 %526, %v286_v55  }
 0x2b5   :  { %v262_v56 = vpop.f32.mrf.mxu0 }
 0x2b6   :  { %v268_v62 = vadd.f32 %v262_v56, %v215_v61 }
 0x2b7   :  { %v518_v57 = vpop.f32.mrf.mxu0 }
 0x2b9   :  { %v265_v58 = vpop.f32.mrf.mxu0 }
 0x2bb   :  { %v519_v59 = vpop.f32.mrf.mxu0 }
 0x311   :  { %v282_v63 = vpop.permute.xlu1 %281 }
 0x312   :  { %v284_v0 = vmul.f32 %v282_v63, %v268_v62 }
 0x314   :  { %v285_v1 = vmax.f32 %v284_v0, 0.0 }
 0x315   :  { %v289_v2 = vpop.permute.xlu1 %288 }
 0x316   :  { %v500_v3 = vpack.c.bf16 %v285_v1, %v285_v1  ;;  %vm290_vm4 = vcmp.eq.s32.totalorder %v289_v2, 1 }
 0x317   :  { %v291_v4 = vsel %vm290_vm4, %v285_v1, 0.0  ;;  %vm499_vm5 = vmpackc.low %vm290_vm4, %vm290_vm4 }
 0x318   :  { %292 = vst [vmem:[#allocation6] sm:$0xff] %v291_v4  ;;  %501 = vmatmul.mubr.msk.bf16.vlgmr.msra.gmra.mxu1 %vm499_vm5, %v500_v3 }
 0x319   :  { %570 = shalt.err (!%p567_p4)
}
 0x31a   :  { %461 = dma.vmem_to_hbm [thread:$0]  %s459_s14, 128, %s718_s6, [#allocation7]   ;;  %v312_v5 = vlaneseq  ;;  %v310_v9 = vld [vmem:[%s717_s5] sm:$0x3] }
 0x31c   :  { %v313_v6 = vshrl.u32 %v312_v5, 7 }
 0x31e   :  { %v314_v7 = vsub.s32 0, %v313_v6  ;;  %v318_v8 = vsub.s32 1, %v313_v6 }
 0x320   :  { %v315_v10 = vrot.slane %v310_v9, %v314_v7  ;;  %v319_v11 = vrot.slane %v310_v9, %v318_v8 }
 0x3d8   :  { %v436_v12 = vpop.f32.mrf.mxu1 }
 0x3d9   :  { %v437_v14 = vadd.f32 %v436_v12, %v315_v10 }
 0x3da   :  { %v438_v13 = vpop.f32.mrf.mxu1 }
 0x3db   :  { %v439_v15 = vadd.f32 %v438_v13, %v319_v11 }
 0x3dc   :  { %v440_v16 = vpop.f32.mrf.mxu1 }
 0x3dd   :  { %v503_v17 = vpack.c.bf16 %v439_v15, %v437_v14 }
 0x3de   :  { %v441_v18 = vpop.f32.mrf.mxu1 }
 0x3df   :  { %451 = vst [vmem:[%s719_s7] sm:$0xff] %v503_v17 }
 0x3e0   :  { %579 = dma.done.wait [#allocation7], 128  }
 0x3e1   :  { %580 = vsyncadd [#allocation7], 4294967168 }
 0x3e2   :  { %469 = vsyncpa [#allocation7], 1 }

// kernel: _lambda_.7
= control target key start
LH: loop header
LB: loop body
LE: loop exit
PB: predicated region body
PF: predicated region fallthrough
CT: control target
= control target key end

     0   :  { %v389_v2 = vmov 0.0   ;;  %vm390_vm0 = vmmov 0   ;;  %s456_s0 = inlined_call_operand.vmem [shape: bf16[16,384], index: 0, kind: input, shape index: {}]   ;;  %s457_s1 = inlined_call_operand.vmem [shape: bf16[8,256], index: 1, kind: input, shape index: {}, may-alias: {1,2}]   ;;  %s458_s2 = inlined_call_operand.vmem [shape: bf16[8,256], index: 2, kind: input, shape index: {}, may-alias: {1,2}]   ;;  %s459_s3 = inlined_call_operand.vmem [shape: bf16[16,8], index: 3, kind: input, shape index: {}]   ;;  %s460_s4 = inlined_call_operand.hbm [shape: f32[16,128], index: 4, kind: output, shape index: {}]  }
   0x1   :  { %v83_v0 = vld [vmem:[%s457_s1] sm:$0xf]  ;;  %v320_v1 = vld [vmem:[%s456_s0 + $0x8] sm:$0xf]  ;;  %333 = vmatprep.subr.bf16.mxu0 %v389_v2  ;;  %335 = vmatprep.mubr.msk.bf16.mxu0 %vm390_vm0, %v389_v2  ;;  %v321_v3 = vld [vmem:[%s456_s0 + $0x14] sm:$0xf] }
   0x2   :  { %30 = vst [vmem:[#allocation4] sm:$0xf] %v320_v1 }
   0x3   :  { %9 = vsyncpa [#allocation6], 0  ;;  %334 = vmatpush3.bf16.xpose.msra.mxu0 %v83_v0  ;;  %32 = vst [vmem:[#allocation4 + $0x4] sm:$0xf] %v321_v3  ;;  %339 = vmatprep.subr.bf16.mxu1 %v389_v2  ;;  %vm74_vm1 = vcmask 7168   ;;  %v326_v6 = vld [vmem:[%s459_s3] sm:$0xff]  }
   0x4   :  { %341 = vmatprep.mubr.msk.bf16.mxu1 %vm390_vm0, %v389_v2  ;;  %v391_v5 = vmov -1e+30   ;;  %77 = vst.msk [vmem:[#allocation3] sm:$0xff] %vm74_vm1, %v389_v2  ;;  %78 = vst.msk [vmem:[#allocation3 + $0x8] sm:$0xff] %vm74_vm1, %v389_v2  ;;  %v327_v9 = vunpack.c.l.bf16 %v326_v6  ;;  %vm143_vm2 = vcmask 64512   ;;  %v328_v15 = vunpack.c.h.bf16 %v326_v6 }
   0x5   :  { %75 = vst.msk [vmem:[#allocation2] sm:$0xff] %vm74_vm1, %v391_v5  ;;  %76 = vst.msk [vmem:[#allocation2 + $0x8] sm:$0xff] %vm74_vm1, %v391_v5  ;;  %v392_v21 = vmov 0   ;;  %v323_v30 = vld [vmem:[%s458_s2 + $0x4] sm:$0xf]  ;;  %vm208_vm3 = vcmask 1043456  }
   0x6   :  { %352 = vset.pattern.permute.xlu1 %v392_v21  ;;  %353 = vset.pattern.permute.xlu0 %v392_v21  ;;  %v210_v31 = vsel %vm208_vm3, %v323_v30, 0  ;;  %s393_s2 = smov [#allocation5]  }
   0x7   :  { %340 = vmatpush3.bf16.msra.mxu1 %v210_v31  ;;  %s305_s22 = sshll.u32 %s393_s2, 4  ;;  %s306_s22 = int_to_ptr.vmem [resolvable:$true] %s305_s22 }
   0x8   :  { %s367_s23 = scalar_lea.vmem %s306_s22, 256  ;;  %p372_p1 = scmp.lt.s32.totalorder %s306_s22, %s306_s22 }
   0x9   :  { %p368_p0 = scmp.ne.s32.totalorder %s306_s22, %s367_s23  ;;  %p373_p2 = scmp.lt.s32.totalorder %s367_s23, %s367_s23 }
   0xa   :  { %v354_v4 = vld [vmem:[#allocation4] sm:$0xff]  }
   0xb   :  { %336 = vmatmul.mubr.bf16.vlgmr.msra.gmra.mxu0 %v354_v4  ;;  %v174_v49 = vld [vmem:[#allocation3] sm:$0xff]  ;;  %v175_v52 = vld [vmem:[#allocation3 + $0x8] sm:$0xff]  ;;  %p374_p3 = por %p373_p2, %p372_p1 }
   0xc   :  { %v141_v22 = vld [vmem:[#allocation2] sm:$0xff]  ;;  %v142_v25 = vld [vmem:[#allocation2 + $0x8] sm:$0xff] }
   0xd   :  { %p375_p4 = pnand %p374_p3, %p368_p0 }
  0xcb   :  { %v124_v7 = vpop.f32.mrf.mxu0 }
  0xcc   :  { %v131_v8 = vmul.f32 0.01, %v124_v7 }
  0xcd   :  { %v337_v10 = vpop.f32.mrf.mxu0 }
  0xce   :  { %v133_v11 = vmax.f32 %v124_v7, %v131_v8 }
  0xcf   :  { %v127_v12 = vpop.f32.mrf.mxu0 }
  0xd0   :  { %v132_v13 = vmul.f32 0.01, %v127_v12  ;;  %v139_v14 = vadd.f32 %v327_v9, %v133_v11 }
  0xd1   :  { %v338_v16 = vpop.f32.mrf.mxu0 }
  0xd2   :  { %v134_v17 = vmax.f32 %v127_v12, %v132_v13  ;;  %v144_v18 = vsel %vm143_vm2, %v139_v14, -inf }
  0xd3   :  { %145 = vmax.xlane.f32.xlu0 %v144_v18 }
  0xd4   :  { %v140_v19 = vadd.f32 %v328_v15, %v134_v17 }
  0xd6   :  { %v147_v20 = vsel %vm143_vm2, %v140_v19, -inf }
  0xd7   :  { %148 = vmax.xlane.f32.xlu0 %v147_v20 }
 0x15c   :  { %v146_v23 = vpop.xlane.xlu0 %145 }
 0x15d   :  { %v150_v24 = vmax.f32 %v141_v22, %v146_v23 }
 0x15f   :  { %v152_v26 = vsub.f32 %v141_v22, %v150_v24  ;;  %257 = vst.msk [vmem:[#allocation2] sm:$0xff] %vm74_vm1, %v150_v24  ;;  %160 = vperm.xlu1 %352, %v150_v24  }
 0x160   :  { %v149_v27 = vpop.xlane.xlu0 %148 }
 0x161   :  { %v151_v28 = vmax.f32 %v142_v25, %v149_v27  ;;  %v154_v44 = vmul.f32 1.442695, %v152_v26 }
 0x163   :  { %v153_v29 = vsub.f32 %v142_v25, %v151_v28  ;;  %258 = vst.msk [vmem:[#allocation2 + $0x8] sm:$0xff] %vm74_vm1, %v151_v28  ;;  %165 = vperm.xlu1 %352, %v151_v28  }
 0x165   :  { %v156_v41 = vmul.f32 1.442695, %v153_v29 }
 0x166   :  { %v262_v45 = vld [vmem:[#allocation2] sm:$0xff] }
 0x167   :  { %vm264_vm4 = vcmp.gt.f32.partialorder %v262_v45, -5e+29 }
 0x168   :  { %v286_v48 = vsel %vm264_vm4, 1, %v392_v21 }
 0x16a   :  { %v263_v60 = vld [vmem:[#allocation2 + $0x8] sm:$0xff] }
 0x16b   :  { %vm265_vm5 = vcmp.gt.f32.partialorder %v263_v60, -5e+29 }
 0x16c   :  { %v287_v62 = vsel %vm265_vm5, 1, %v392_v21 }
 0x1da   :  { %v161_v32 = vpop.permute.xlu1 %160 }
 0x1db   :  { %v168_v33 = vsub.f32 %v139_v14, %v161_v32 }
 0x1dd   :  { %v170_v34 = vmul.f32 1.442695, %v168_v33 }
 0x1de   :  { %v166_v35 = vpop.permute.xlu1 %165 }
 0x1df   :  { %355 = vpow2.f32 %v170_v34  ;;  %v169_v36 = vsub.f32 %v140_v19, %v166_v35 }
 0x1e1   :  { %v172_v37 = vmul.f32 1.442695, %v169_v36 }
 0x1e3   :  { %357 = vpow2.f32 %v172_v37 }
 0x1e4   :  { %359 = vpow2.f32 %v156_v41 }
 0x1e5   :  { %361 = vpow2.f32 %v154_v44 }
 0x1ec   :  { %v356_v38 = vpop.eup %355 }
 0x1ed   :  { %v178_v39 = vsel %vm143_vm2, %v356_v38, 0.0 }
 0x1ee   :  { %179 = vadd.xlane.f32.xlu0 %v178_v39 }
 0x1f0   :  { %v358_v40 = vpop.eup %357 }
 0x1f1   :  { %v181_v42 = vsel %vm143_vm2, %v358_v40, 0.0  ;;  %v203_v43 = vpack.c.bf16 %v358_v40, %v356_v38  ;;  %v360_v46 = vpop.eup %359 }
 0x1f2   :  { %182 = vadd.xlane.f32.xlu1 %v181_v42  ;;  %v362_v47 = vpop.eup %361  ;;  %v177_v54 = vmul.f32 %v360_v46, %v175_v52 }
 0x1f3   :  { %342 = vmatmul.mubr.msk.bf16.vlgmr.msra.gmra.mxu1 %vm143_vm2, %v203_v43  ;;  %v176_v50 = vmul.f32 %v362_v47, %v174_v49 }
 0x203   :  { %198 = vperm.xlu1 %352, %v360_v46  }
 0x204   :  { %193 = vperm.xlu0 %353, %v362_v47  }
 0x207   :  { %289 = vperm.xlu1 %352, %v286_v48  }
 0x277   :  { %v180_v51 = vpop.xlane.xlu0 %179 }
 0x278   :  { %v184_v53 = vadd.f32 %v180_v51, %v176_v50 }
 0x27a   :  { %187 = vst.msk [vmem:[#allocation3] sm:$0xff] %vm74_vm1, %v184_v53 }
 0x27b   :  { %v183_v55 = vpop.xlane.xlu1 %182 }
 0x27c   :  { %v185_v56 = vadd.f32 %v183_v55, %v177_v54 }
 0x27e   :  { %188 = vst.msk [vmem:[#allocation3 + $0x8] sm:$0xff] %vm74_vm1, %v185_v56 }
 0x27f   :  { %v194_v3 = vpop.permute.xlu0 %193  ;;  %v199_v4 = vpop.permute.xlu1 %198 }
 0x280   :  { %v201_v5 = vmul.f32 0.0, %v194_v3  ;;  %v202_v8 = vmul.f32 0.0, %v199_v4 }
 0x281   :  { %v268_v57 = vld [vmem:[#allocation3] sm:$0xff] }
 0x282   :  { %363 = vrcp.f32 %v268_v57 }
 0x283   :  { %v290_v9 = vpop.permute.xlu1 %289 }
 0x284   :  { %vm294_vm6 = vcmp.eq.s32.totalorder %v290_v9, 1 }
 0x285   :  { %v269_v58 = vld [vmem:[#allocation3 + $0x8] sm:$0xff] }
 0x286   :  { %365 = vrcp.f32 %v269_v58 }
 0x28f   :  { %v364_v59 = vpop.eup %363 }
 0x290   :  { %274 = vperm.xlu0 %353, %v364_v59  }
 0x293   :  { %v366_v61 = vpop.eup %365 }
 0x294   :  { %279 = vperm.xlu0 %353, %v366_v61  }
 0x298   :  { %292 = vperm.xlu0 %353, %v287_v62  }
 0x2b3   :  { %v246_v63 = vpop.f32.mrf.mxu1 }
 0x2b4   :  { %v253_v6 = vadd.f32 %v246_v63, %v201_v5 }
 0x2b5   :  { %v343_v0 = vpop.f32.mrf.mxu1 }
 0x2b7   :  { %v249_v1 = vpop.f32.mrf.mxu1 }
 0x2b8   :  { %v254_v11 = vadd.f32 %v249_v1, %v202_v8 }
 0x2b9   :  { %v344_v2 = vpop.f32.mrf.mxu1 }
 0x30b   :  { %v275_v7 = vpop.permute.xlu0 %274 }
 0x30c   :  { %v282_v10 = vmul.f32 %v275_v7, %v253_v6 }
 0x30e   :  { %v284_v12 = vmax.f32 %v282_v10, 0.0 }
 0x30f   :  { %v280_v13 = vpop.permute.xlu0 %279 }
 0x310   :  { %v296_v14 = vsel %vm294_vm6, %v284_v12, 0.0  ;;  %v283_v15 = vmul.f32 %v280_v13, %v254_v11 }
 0x311   :  { %298 = vst [vmem:[#allocation5] sm:$0xff] %v296_v14 }
 0x312   :  { %v285_v16 = vmax.f32 %v283_v15, 0.0 }
 0x313   :  { %v293_v17 = vpop.permute.xlu0 %292 }
 0x314   :  { %vm295_vm7 = vcmp.eq.s32.totalorder %v293_v17, 1 }
 0x315   :  { %v297_v18 = vsel %vm295_vm7, %v285_v16, 0.0 }
 0x316   :  { %299 = vst [vmem:[#allocation5 + $0x8] sm:$0xff] %v297_v18 }
 0x317   :  { %378 = shalt.err (!%p375_p4)
}
 0x318   :  { %s394_s24 = smov 128   ;;  %s395_s25 = smov 8  }
 0x319   :  { %311 = dma.vmem_to_hbm [thread:$0]  %s306_s22, 256, %s460_s4, [#allocation6], %s394_s24, %s394_s24, %s395_s25  }
 0x31a   :  { %387 = dma.done.wait [#allocation6], 256  }
 0x31b   :  { %388 = vsyncadd [#allocation6], 4294967040 }
 0x31c   :  { %315 = vsyncpa [#allocation6], 1 }

</bundles_post_ra>
